<compile_context>
chip_gen: v7x
topology: tpu7x:2x2x1
jax: 0.10.0
libtpu: 0.0.40
codegen_flags: <defaults>
</compile_context>

<pallas_src>
import functools

import jax
import jax.numpy as jnp
from jax.experimental import pallas as pl
from jax.experimental.pallas import tpu as pltpu


def _lstm_csinet_kernel(x_ref, wih1_ref, b1_ref, wrec_ref, b2_ref,
                        wfc_ref, bfc_ref, out_ref, h2_ref,
                        *, seq_len, batch_tile, hidden_size):
    """One batch tile of the 2-layer wavefronted LSTM + FC head.

    x_ref   : (T*BT, D_in)  time-major rows (t, b_local) for this batch tile
    wih1_ref: (D_in, 4H)    layer-1 input->gates (pre-transposed, i,f,o,g order)
    b1_ref  : (1, 4H)       combined layer-1 bias
    wrec_ref: (2H, 8H)      fused recurrent block [[Whh1, Wih2], [0, Whh2]]
    b2_ref  : (1, 4H)       combined layer-2 bias
    wfc_ref : (H, 128)      FC weight, zero-padded lane-dense
    bfc_ref : (1, 128)      FC bias, zero-padded
    out_ref : (T*BT, 128)   lane-dense output slab
    h2_ref  : (T*BT, H)     VMEM scratch: layer-2 hidden sequence
    """
    T, BT, H = seq_len, batch_tile, hidden_size
    H3, H4 = 3 * H, 4 * H

    def cell(g4, c):
        # Gate column order (set wrapper-side): i, f, o, g.
        ifo = 0.5 * jnp.tanh(0.5 * g4[:, :H3]) + 0.5   # sigmoid via one EUP tanh
        gg = jnp.tanh(g4[:, H3:])
        c_new = ifo[:, H:2 * H] * c + ifo[:, :H] * gg
        h_new = ifo[:, 2 * H:H3] * jnp.tanh(c_new)
        return h_new, c_new

    # Hoisted layer-1 input projection over all T*BT rows (off the serial path).
    gates_in1 = (jnp.dot(x_ref[...], wih1_ref[...],
                         preferred_element_type=jnp.float32) + b1_ref[...])
    wrec = wrec_ref[...]
    b2 = b2_ref[...]

    zeros = jnp.zeros((BT, H), jnp.float32)
    h1, c1, h2, c2 = zeros, zeros, zeros, zeros

    # Wavefront: wave w runs layer-1 step w and layer-2 step w-1 together.
    for w in range(T + 1):
        if w == 0:
            # h1_{-1} = 0 -> no recurrent matmul for the first layer-1 step.
            h1, c1 = cell(gates_in1[:BT, :], c1)
            continue
        # One fused MXU push for both layers' recurrent pre-activations.
        hcat = jnp.concatenate([h1, h2], axis=1)                        # (BT, 2H)
        rec = jnp.dot(hcat, wrec, preferred_element_type=jnp.float32)   # (BT, 8H)
        g2 = rec[:, H4:] + b2                                           # layer-2 step w-1
        if w < T:
            g1 = gates_in1[w * BT:(w + 1) * BT, :] + rec[:, :H4]        # layer-1 step w
            h1_new, c1 = cell(g1, c1)
        h2, c2 = cell(g2, c2)
        h2_ref[(w - 1) * BT:w * BT, :] = h2
        if w < T:
            h1 = h1_new

    # FC head: one batched matmul, lane-dense (128-wide) store.
    out_ref[...] = (jnp.dot(h2_ref[...], wfc_ref[...],
                            preferred_element_type=jnp.float32) + bfc_ref[...])


def lstm_csinet_forward(x, params, *, num_rx, num_tx, pilot_length,
                        hidden_size, out_dim2, max_batch_tile=256):
    """x: [B, 4, num_rx, num_tx, pilot_length] -> [B, num_rx, num_tx, T, 2]."""
    B = x.shape[0]
    T = pilot_length
    H = hidden_size
    D_in = 4 * num_rx * num_tx
    O = num_rx * num_tx * out_dim2
    O_pad = ((O + 127) // 128) * 128          # lane-dense FC output columns

    # Batch tiling: a multiple of 8 sublanes per tile; large batches get a
    # "parallel" grid axis (both v7x TensorCores), small batches run grid=(1,).
    BT = min(((B + 7) // 8) * 8, max_batch_tile)
    Bp = ((B + BT - 1) // BT) * BT
    n_tiles = Bp // BT

    # ---- glue: NCHW-ish -> time-major, batch padded & tiled ------------------
    x_seq = jnp.transpose(x, (4, 0, 1, 2, 3)).reshape(T, B, D_in).astype(jnp.float32)
    x_seq = jnp.pad(x_seq, ((0, 0), (0, Bp - B), (0, 0)))
    # (n_tiles, T*BT, D_in); within each tile rows are ordered (t, b_local).
    x_tiles = (x_seq.reshape(T, n_tiles, BT, D_in)
               .transpose(1, 0, 2, 3).reshape(n_tiles, T * BT, D_in))

    # ---- weights: reorder gates to (i,f,o,g), transpose, fuse, pad ----------
    def reorder(w):  # PyTorch rows (i,f,g,o) -> (i,f,o,g)
        return jnp.concatenate([w[:2 * H], w[3 * H:4 * H], w[2 * H:3 * H]], axis=0)

    wih1_t = reorder(params["w_ih_l0"]).T.astype(jnp.float32)           # (D_in, 4H)
    whh1_t = reorder(params["w_hh_l0"]).T.astype(jnp.float32)           # (H, 4H)
    b1 = reorder(params["b_ih_l0"] + params["b_hh_l0"]
                 ).reshape(1, 4 * H).astype(jnp.float32)
    wih2_t = reorder(params["w_ih_l1"]).T.astype(jnp.float32)           # (H, 4H)
    whh2_t = reorder(params["w_hh_l1"]).T.astype(jnp.float32)           # (H, 4H)
    b2 = reorder(params["b_ih_l1"] + params["b_hh_l1"]
                 ).reshape(1, 4 * H).astype(jnp.float32)

    # Fused recurrent block matrix: [h1, h2] @ [[Whh1, Wih2], [0, Whh2]].
    wrec = jnp.concatenate([
        jnp.concatenate([whh1_t, wih2_t], axis=1),
        jnp.concatenate([jnp.zeros((H, 4 * H), jnp.float32), whh2_t], axis=1),
    ], axis=0)                                                           # (2H, 8H)

    wfc_t = jnp.zeros((H, O_pad), jnp.float32).at[:, :O].set(
        params["fc_w"].T.astype(jnp.float32))                            # (H, O_pad)
    bfc = jnp.zeros((1, O_pad), jnp.float32).at[:, :O].set(
        params["fc_b"].astype(jnp.float32))                              # (1, O_pad)

    kernel = functools.partial(_lstm_csinet_kernel, seq_len=T,
                               batch_tile=BT, hidden_size=H)

    bcast = lambda a: pl.BlockSpec(a.shape, lambda i: (0,) * a.ndim)

    out_tiles = pl.pallas_call(
        kernel,
        out_shape=jax.ShapeDtypeStruct((n_tiles, T * BT, O_pad), jnp.float32),
        grid_spec=pltpu.PrefetchScalarGridSpec(
            num_scalar_prefetch=0,
            grid=(n_tiles,),
            in_specs=[pl.BlockSpec((None, T * BT, D_in), lambda i: (i, 0, 0)),
                      bcast(wih1_t), bcast(b1), bcast(wrec), bcast(b2),
                      bcast(wfc_t), bcast(bfc)],
            out_specs=pl.BlockSpec((None, T * BT, O_pad), lambda i: (i, 0, 0)),
            scratch_shapes=[pltpu.VMEM((T * BT, H), jnp.float32)],
        ),
        compiler_params=pltpu.CompilerParams(
            dimension_semantics=("parallel",)),
    )(x_tiles, wih1_t, b1, wrec, b2, wfc_t, bfc)

    # ---- glue: drop padding, restore [B, rx, tx, T, 2] -----------------------
    out = (out_tiles.reshape(n_tiles, T, BT, O_pad)
           .transpose(1, 0, 2, 3).reshape(T, Bp, O_pad)[:, :B, :O])      # (T, B, O)
    out = out.reshape(T, B, num_rx, num_tx, out_dim2)
    return jnp.transpose(out, (1, 2, 3, 0, 4))


# ----------------------------- reference (pure JAX) -----------------------------
def ref_forward(x, params, *, num_rx, num_tx, pilot_length, hidden_size, out_dim2):
    B = x.shape[0]
    T = pilot_length
    H = hidden_size
    xs = jnp.transpose(x, (4, 0, 1, 2, 3)).reshape(T, B, -1).astype(jnp.float32)

    def run_layer(seq, wih, whh, bih, bhh):
        h = jnp.zeros((B, H), jnp.float32)
        c = jnp.zeros((B, H), jnp.float32)
        outs = []
        for t in range(T):
            gates = seq[t] @ wih.T + bih + h @ whh.T + bhh
            i = jax.nn.sigmoid(gates[:, 0 * H:1 * H])
            f = jax.nn.sigmoid(gates[:, 1 * H:2 * H])
            g = jnp.tanh(gates[:, 2 * H:3 * H])
            o = jax.nn.sigmoid(gates[:, 3 * H:4 * H])
            c = f * c + i * g
            h = o * jnp.tanh(c)
            outs.append(h)
        return jnp.stack(outs, axis=0)

    h1 = run_layer(xs, params["w_ih_l0"], params["w_hh_l0"],
                   params["b_ih_l0"], params["b_hh_l0"])
    h2 = run_layer(h1, params["w_ih_l1"], params["w_hh_l1"],
                   params["b_ih_l1"], params["b_hh_l1"])
    out = h2 @ params["fc_w"].T + params["fc_b"]                 # (T, B, O)
    out = out.reshape(T, B, num_rx, num_tx, out_dim2)
    return jnp.transpose(out, (1, 2, 3, 0, 4))


def init_params(key, *, num_rx, num_tx, hidden_size, out_dim2):
    D_in = 4 * num_rx * num_tx
    H = hidden_size
    O = num_rx * num_tx * out_dim2
    k = 1.0 / jnp.sqrt(H)
    names_shapes = [
        ("w_ih_l0", (4 * H, D_in)), ("w_hh_l0", (4 * H, H)),
        ("b_ih_l0", (4 * H,)),      ("b_hh_l0", (4 * H,)),
        ("w_ih_l1", (4 * H, H)),    ("w_hh_l1", (4 * H, H)),
        ("b_ih_l1", (4 * H,)),      ("b_hh_l1", (4 * H,)),
        ("fc_w", (O, H)),           ("fc_b", (O,)),
    ]
    params = {}
    for name, shape in names_shapes:
        key, sub = jax.random.split(key)
        params[name] = jax.random.uniform(sub, shape, jnp.float32, -k, k)
    return params


if __name__ == "__main__":
    # Small shapes: batch=2, num_rx=4, num_tx=4, pilot_length=8, hidden=32.
    B, num_rx, num_tx, T, H, out_dim2 = 2, 4, 4, 8, 32, 2

    key = jax.random.PRNGKey(0)
    key, kx = jax.random.split(key)
    x = jax.random.normal(kx, (B, 4, num_rx, num_tx, T), jnp.float32)
    params = init_params(key, num_rx=num_rx, num_tx=num_tx,
                         hidden_size=H, out_dim2=out_dim2)

    out = lstm_csinet_forward(x, params, num_rx=num_rx, num_tx=num_tx,
                              pilot_length=T, hidden_size=H, out_dim2=out_dim2)
    out = jax.block_until_ready(out)

    ref = ref_forward(x, params, num_rx=num_rx, num_tx=num_tx,
                      pilot_length=T, hidden_size=H, out_dim2=out_dim2)

    assert out.shape == (B, num_rx, num_tx, T, out_dim2), out.shape
    # Tolerance 1e-4: kernel computes sigmoid via the exact tanh identity
    # (0.5*tanh(x/2)+0.5), which differs from jax.nn.sigmoid by ~1 ulp/elem.
    assert jnp.allclose(out, ref, atol=1e-4, rtol=1e-4), (
        float(jnp.max(jnp.abs(out - ref))))

    print("KERNEL_OK")
</pallas_src>

<mosaic_0001>
module attributes {stable_mosaic.version = 11 : i64} {
  func.func @_lstm_csinet_kernel(%arg0: i32, %arg1: memref<1x64x64xf32, #tpu.memory_space<vmem>>, %arg2: memref<64x128xf32, #tpu.memory_space<vmem>>, %arg3: memref<1x128xf32, #tpu.memory_space<vmem>>, %arg4: memref<64x256xf32, #tpu.memory_space<vmem>>, %arg5: memref<1x128xf32, #tpu.memory_space<vmem>>, %arg6: memref<32x128xf32, #tpu.memory_space<vmem>>, %arg7: memref<1x128xf32, #tpu.memory_space<vmem>>, %arg8: memref<1x64x128xf32, #tpu.memory_space<vmem>>, %arg9: memref<64x32xf32, #tpu.memory_space<vmem>>) attributes {dimension_semantics = [#tpu.dimension_semantics<parallel>], iteration_bounds = array<i64: 1>, scalar_prefetch = 0 : i64, scratch_operands = 1 : i64, tpu.core_type = #tpu.core_type<tc>, window_params = [{transform_indices = @transform_0, window_bounds = array<i64: 1, 64, 64>}, {pipeline_mode = #tpu.pipeline_mode<synchronous>, transform_indices = @transform_1, window_bounds = array<i64: 64, 128>}, {pipeline_mode = #tpu.pipeline_mode<synchronous>, transform_indices = @transform_2, window_bounds = array<i64: 1, 128>}, {pipeline_mode = #tpu.pipeline_mode<synchronous>, transform_indices = @transform_3, window_bounds = array<i64: 64, 256>}, {pipeline_mode = #tpu.pipeline_mode<synchronous>, transform_indices = @transform_4, window_bounds = array<i64: 1, 128>}, {pipeline_mode = #tpu.pipeline_mode<synchronous>, transform_indices = @transform_5, window_bounds = array<i64: 32, 128>}, {pipeline_mode = #tpu.pipeline_mode<synchronous>, transform_indices = @transform_6, window_bounds = array<i64: 1, 128>}, {transform_indices = @transform_7, window_bounds = array<i64: 1, 64, 128>}]} {
    %c0 = arith.constant 0 : index
    %c0_0 = arith.constant 0 : index
    %c0_1 = arith.constant 0 : index
    %0 = vector.load %arg1[%c0, %c0_0, %c0_1] : memref<1x64x64xf32, #tpu.memory_space<vmem>>, vector<1x64x64xf32>
    %1 = vector.shape_cast %0 : vector<1x64x64xf32> to vector<64x64xf32>
    %c0_2 = arith.constant 0 : index
    %c0_3 = arith.constant 0 : index
    %2 = vector.load %arg2[%c0_2, %c0_3] : memref<64x128xf32, #tpu.memory_space<vmem>>, vector<64x128xf32>
    %cst = arith.constant dense<0.000000e+00> : vector<64x128xf32>
    %3 = tpu.matmul %1, %2, %cst {dimension_numbers = #tpu.dot_dimension_numbers<[1], [0], [0], [1], [0, 0, 1, 1], [], []>} : vector<64x64xf32>, vector<64x128xf32>, vector<64x128xf32> -> vector<64x128xf32>
    %c0_4 = arith.constant 0 : index
    %c0_5 = arith.constant 0 : index
    %4 = vector.load %arg3[%c0_4, %c0_5] : memref<1x128xf32, #tpu.memory_space<vmem>>, vector<1x128xf32>
    %5 = vector.broadcast %4 : vector<1x128xf32> to vector<64x128xf32>
    %6 = arith.addf %3, %5 : vector<64x128xf32>
    %c0_6 = arith.constant 0 : index
    %c0_7 = arith.constant 0 : index
    %7 = vector.load %arg4[%c0_6, %c0_7] : memref<64x256xf32, #tpu.memory_space<vmem>>, vector<64x256xf32>
    %c0_8 = arith.constant 0 : index
    %c0_9 = arith.constant 0 : index
    %8 = vector.load %arg5[%c0_8, %c0_9] : memref<1x128xf32, #tpu.memory_space<vmem>>, vector<1x128xf32>
    %cst_10 = arith.constant 0.000000e+00 : f32
    %9 = vector.broadcast %cst_10 : f32 to vector<8x32xf32>
    %10 = vector.extract_strided_slice %6 {offsets = [0, 0], sizes = [8, 128], strides = [1, 1]} : vector<64x128xf32> to vector<8x128xf32>
    %11 = vector.extract_strided_slice %10 {offsets = [0, 0], sizes = [8, 96], strides = [1, 1]} : vector<8x128xf32> to vector<8x96xf32>
    %cst_11 = arith.constant 5.000000e-01 : f32
    %12 = vector.broadcast %cst_11 : f32 to vector<8x96xf32>
    %13 = arith.mulf %12, %11 : vector<8x96xf32>
    %14 = math.tanh %13 : vector<8x96xf32>
    %cst_12 = arith.constant 5.000000e-01 : f32
    %15 = vector.broadcast %cst_12 : f32 to vector<8x96xf32>
    %16 = arith.mulf %15, %14 : vector<8x96xf32>
    %cst_13 = arith.constant 5.000000e-01 : f32
    %17 = vector.broadcast %cst_13 : f32 to vector<8x96xf32>
    %18 = arith.addf %16, %17 : vector<8x96xf32>
    %19 = vector.extract_strided_slice %10 {offsets = [0, 96], sizes = [8, 32], strides = [1, 1]} : vector<8x128xf32> to vector<8x32xf32>
    %20 = math.tanh %19 : vector<8x32xf32>
    %21 = vector.extract_strided_slice %18 {offsets = [0, 32], sizes = [8, 32], strides = [1, 1]} : vector<8x96xf32> to vector<8x32xf32>
    %22 = arith.mulf %21, %9 : vector<8x32xf32>
    %23 = vector.extract_strided_slice %18 {offsets = [0, 0], sizes = [8, 32], strides = [1, 1]} : vector<8x96xf32> to vector<8x32xf32>
    %24 = arith.mulf %23, %20 : vector<8x32xf32>
    %25 = arith.addf %22, %24 : vector<8x32xf32>
    %26 = vector.extract_strided_slice %18 {offsets = [0, 64], sizes = [8, 32], strides = [1, 1]} : vector<8x96xf32> to vector<8x32xf32>
    %27 = math.tanh %25 : vector<8x32xf32>
    %28 = arith.mulf %26, %27 : vector<8x32xf32>
    %29 = tpu.concatenate %28, %9 in 1 : vector<8x32xf32>, vector<8x32xf32> -> vector<8x64xf32>
    %cst_14 = arith.constant dense<0.000000e+00> : vector<8x256xf32>
    %30 = tpu.matmul %29, %7, %cst_14 {dimension_numbers = #tpu.dot_dimension_numbers<[1], [0], [0], [1], [0, 0, 1, 1], [], []>} : vector<8x64xf32>, vector<64x256xf32>, vector<8x256xf32> -> vector<8x256xf32>
    %31 = vector.extract_strided_slice %30 {offsets = [0, 128], sizes = [8, 128], strides = [1, 1]} : vector<8x256xf32> to vector<8x128xf32>
    %32 = vector.broadcast %8 : vector<1x128xf32> to vector<8x128xf32>
    %33 = arith.addf %31, %32 : vector<8x128xf32>
    %34 = vector.extract_strided_slice %6 {offsets = [8, 0], sizes = [8, 128], strides = [1, 1]} : vector<64x128xf32> to vector<8x128xf32>
    %35 = vector.extract_strided_slice %30 {offsets = [0, 0], sizes = [8, 128], strides = [1, 1]} : vector<8x256xf32> to vector<8x128xf32>
    %36 = arith.addf %34, %35 : vector<8x128xf32>
    %37 = vector.extract_strided_slice %36 {offsets = [0, 0], sizes = [8, 96], strides = [1, 1]} : vector<8x128xf32> to vector<8x96xf32>
    %cst_15 = arith.constant 5.000000e-01 : f32
    %38 = vector.broadcast %cst_15 : f32 to vector<8x96xf32>
    %39 = arith.mulf %38, %37 : vector<8x96xf32>
    %40 = math.tanh %39 : vector<8x96xf32>
    %cst_16 = arith.constant 5.000000e-01 : f32
    %41 = vector.broadcast %cst_16 : f32 to vector<8x96xf32>
    %42 = arith.mulf %41, %40 : vector<8x96xf32>
    %cst_17 = arith.constant 5.000000e-01 : f32
    %43 = vector.broadcast %cst_17 : f32 to vector<8x96xf32>
    %44 = arith.addf %42, %43 : vector<8x96xf32>
    %45 = vector.extract_strided_slice %36 {offsets = [0, 96], sizes = [8, 32], strides = [1, 1]} : vector<8x128xf32> to vector<8x32xf32>
    %46 = math.tanh %45 : vector<8x32xf32>
    %47 = vector.extract_strided_slice %44 {offsets = [0, 32], sizes = [8, 32], strides = [1, 1]} : vector<8x96xf32> to vector<8x32xf32>
    %48 = arith.mulf %47, %25 : vector<8x32xf32>
    %49 = vector.extract_strided_slice %44 {offsets = [0, 0], sizes = [8, 32], strides = [1, 1]} : vector<8x96xf32> to vector<8x32xf32>
    %50 = arith.mulf %49, %46 : vector<8x32xf32>
    %51 = arith.addf %48, %50 : vector<8x32xf32>
    %52 = vector.extract_strided_slice %44 {offsets = [0, 64], sizes = [8, 32], strides = [1, 1]} : vector<8x96xf32> to vector<8x32xf32>
    %53 = math.tanh %51 : vector<8x32xf32>
    %54 = arith.mulf %52, %53 : vector<8x32xf32>
    %55 = vector.extract_strided_slice %33 {offsets = [0, 0], sizes = [8, 96], strides = [1, 1]} : vector<8x128xf32> to vector<8x96xf32>
    %cst_18 = arith.constant 5.000000e-01 : f32
    %56 = vector.broadcast %cst_18 : f32 to vector<8x96xf32>
    %57 = arith.mulf %56, %55 : vector<8x96xf32>
    %58 = math.tanh %57 : vector<8x96xf32>
    %cst_19 = arith.constant 5.000000e-01 : f32
    %59 = vector.broadcast %cst_19 : f32 to vector<8x96xf32>
    %60 = arith.mulf %59, %58 : vector<8x96xf32>
    %cst_20 = arith.constant 5.000000e-01 : f32
    %61 = vector.broadcast %cst_20 : f32 to vector<8x96xf32>
    %62 = arith.addf %60, %61 : vector<8x96xf32>
    %63 = vector.extract_strided_slice %33 {offsets = [0, 96], sizes = [8, 32], strides = [1, 1]} : vector<8x128xf32> to vector<8x32xf32>
    %64 = math.tanh %63 : vector<8x32xf32>
    %65 = vector.extract_strided_slice %62 {offsets = [0, 32], sizes = [8, 32], strides = [1, 1]} : vector<8x96xf32> to vector<8x32xf32>
    %66 = arith.mulf %65, %9 : vector<8x32xf32>
    %67 = vector.extract_strided_slice %62 {offsets = [0, 0], sizes = [8, 32], strides = [1, 1]} : vector<8x96xf32> to vector<8x32xf32>
    %68 = arith.mulf %67, %64 : vector<8x32xf32>
    %69 = arith.addf %66, %68 : vector<8x32xf32>
    %70 = vector.extract_strided_slice %62 {offsets = [0, 64], sizes = [8, 32], strides = [1, 1]} : vector<8x96xf32> to vector<8x32xf32>
    %71 = math.tanh %69 : vector<8x32xf32>
    %72 = arith.mulf %70, %71 : vector<8x32xf32>
    %c0_21 = arith.constant 0 : index
    %c0_22 = arith.constant 0 : index
    %73 = vector.load %arg9[%c0_21, %c0_22] : memref<64x32xf32, #tpu.memory_space<vmem>>, vector<8x32xf32>
    tpu.vector_store %arg9[%c0_21, %c0_22], %72 {strides = array<i32>} : memref<64x32xf32, #tpu.memory_space<vmem>>, vector<8x32xf32>,
    %74 = tpu.concatenate %54, %72 in 1 : vector<8x32xf32>, vector<8x32xf32> -> vector<8x64xf32>
    %cst_23 = arith.constant dense<0.000000e+00> : vector<8x256xf32>
    %75 = tpu.matmul %74, %7, %cst_23 {dimension_numbers = #tpu.dot_dimension_numbers<[1], [0], [0], [1], [0, 0, 1, 1], [], []>} : vector<8x64xf32>, vector<64x256xf32>, vector<8x256xf32> -> vector<8x256xf32>
    %76 = vector.extract_strided_slice %75 {offsets = [0, 128], sizes = [8, 128], strides = [1, 1]} : vector<8x256xf32> to vector<8x128xf32>
    %77 = vector.broadcast %8 : vector<1x128xf32> to vector<8x128xf32>
    %78 = arith.addf %76, %77 : vector<8x128xf32>
    %79 = vector.extract_strided_slice %6 {offsets = [16, 0], sizes = [8, 128], strides = [1, 1]} : vector<64x128xf32> to vector<8x128xf32>
    %80 = vector.extract_strided_slice %75 {offsets = [0, 0], sizes = [8, 128], strides = [1, 1]} : vector<8x256xf32> to vector<8x128xf32>
    %81 = arith.addf %79, %80 : vector<8x128xf32>
    %82 = vector.extract_strided_slice %81 {offsets = [0, 0], sizes = [8, 96], strides = [1, 1]} : vector<8x128xf32> to vector<8x96xf32>
    %cst_24 = arith.constant 5.000000e-01 : f32
    %83 = vector.broadcast %cst_24 : f32 to vector<8x96xf32>
    %84 = arith.mulf %83, %82 : vector<8x96xf32>
    %85 = math.tanh %84 : vector<8x96xf32>
    %cst_25 = arith.constant 5.000000e-01 : f32
    %86 = vector.broadcast %cst_25 : f32 to vector<8x96xf32>
    %87 = arith.mulf %86, %85 : vector<8x96xf32>
    %cst_26 = arith.constant 5.000000e-01 : f32
    %88 = vector.broadcast %cst_26 : f32 to vector<8x96xf32>
    %89 = arith.addf %87, %88 : vector<8x96xf32>
    %90 = vector.extract_strided_slice %81 {offsets = [0, 96], sizes = [8, 32], strides = [1, 1]} : vector<8x128xf32> to vector<8x32xf32>
    %91 = math.tanh %90 : vector<8x32xf32>
    %92 = vector.extract_strided_slice %89 {offsets = [0, 32], sizes = [8, 32], strides = [1, 1]} : vector<8x96xf32> to vector<8x32xf32>
    %93 = arith.mulf %92, %51 : vector<8x32xf32>
    %94 = vector.extract_strided_slice %89 {offsets = [0, 0], sizes = [8, 32], strides = [1, 1]} : vector<8x96xf32> to vector<8x32xf32>
    %95 = arith.mulf %94, %91 : vector<8x32xf32>
    %96 = arith.addf %93, %95 : vector<8x32xf32>
    %97 = vector.extract_strided_slice %89 {offsets = [0, 64], sizes = [8, 32], strides = [1, 1]} : vector<8x96xf32> to vector<8x32xf32>
    %98 = math.tanh %96 : vector<8x32xf32>
    %99 = arith.mulf %97, %98 : vector<8x32xf32>
    %100 = vector.extract_strided_slice %78 {offsets = [0, 0], sizes = [8, 96], strides = [1, 1]} : vector<8x128xf32> to vector<8x96xf32>
    %cst_27 = arith.constant 5.000000e-01 : f32
    %101 = vector.broadcast %cst_27 : f32 to vector<8x96xf32>
    %102 = arith.mulf %101, %100 : vector<8x96xf32>
    %103 = math.tanh %102 : vector<8x96xf32>
    %cst_28 = arith.constant 5.000000e-01 : f32
    %104 = vector.broadcast %cst_28 : f32 to vector<8x96xf32>
    %105 = arith.mulf %104, %103 : vector<8x96xf32>
    %cst_29 = arith.constant 5.000000e-01 : f32
    %106 = vector.broadcast %cst_29 : f32 to vector<8x96xf32>
    %107 = arith.addf %105, %106 : vector<8x96xf32>
    %108 = vector.extract_strided_slice %78 {offsets = [0, 96], sizes = [8, 32], strides = [1, 1]} : vector<8x128xf32> to vector<8x32xf32>
    %109 = math.tanh %108 : vector<8x32xf32>
    %110 = vector.extract_strided_slice %107 {offsets = [0, 32], sizes = [8, 32], strides = [1, 1]} : vector<8x96xf32> to vector<8x32xf32>
    %111 = arith.mulf %110, %69 : vector<8x32xf32>
    %112 = vector.extract_strided_slice %107 {offsets = [0, 0], sizes = [8, 32], strides = [1, 1]} : vector<8x96xf32> to vector<8x32xf32>
    %113 = arith.mulf %112, %109 : vector<8x32xf32>
    %114 = arith.addf %111, %113 : vector<8x32xf32>
    %115 = vector.extract_strided_slice %107 {offsets = [0, 64], sizes = [8, 32], strides = [1, 1]} : vector<8x96xf32> to vector<8x32xf32>
    %116 = math.tanh %114 : vector<8x32xf32>
    %117 = arith.mulf %115, %116 : vector<8x32xf32>
    %c8 = arith.constant 8 : index
    %c0_30 = arith.constant 0 : index
    %118 = vector.load %arg9[%c8, %c0_30] : memref<64x32xf32, #tpu.memory_space<vmem>>, vector<8x32xf32>
    tpu.vector_store %arg9[%c8, %c0_30], %117 {strides = array<i32>} : memref<64x32xf32, #tpu.memory_space<vmem>>, vector<8x32xf32>,
    %119 = tpu.concatenate %99, %117 in 1 : vector<8x32xf32>, vector<8x32xf32> -> vector<8x64xf32>
    %cst_31 = arith.constant dense<0.000000e+00> : vector<8x256xf32>
    %120 = tpu.matmul %119, %7, %cst_31 {dimension_numbers = #tpu.dot_dimension_numbers<[1], [0], [0], [1], [0, 0, 1, 1], [], []>} : vector<8x64xf32>, vector<64x256xf32>, vector<8x256xf32> -> vector<8x256xf32>
    %121 = vector.extract_strided_slice %120 {offsets = [0, 128], sizes = [8, 128], strides = [1, 1]} : vector<8x256xf32> to vector<8x128xf32>
    %122 = vector.broadcast %8 : vector<1x128xf32> to vector<8x128xf32>
    %123 = arith.addf %121, %122 : vector<8x128xf32>
    %124 = vector.extract_strided_slice %6 {offsets = [24, 0], sizes = [8, 128], strides = [1, 1]} : vector<64x128xf32> to vector<8x128xf32>
    %125 = vector.extract_strided_slice %120 {offsets = [0, 0], sizes = [8, 128], strides = [1, 1]} : vector<8x256xf32> to vector<8x128xf32>
    %126 = arith.addf %124, %125 : vector<8x128xf32>
    %127 = vector.extract_strided_slice %126 {offsets = [0, 0], sizes = [8, 96], strides = [1, 1]} : vector<8x128xf32> to vector<8x96xf32>
    %cst_32 = arith.constant 5.000000e-01 : f32
    %128 = vector.broadcast %cst_32 : f32 to vector<8x96xf32>
    %129 = arith.mulf %128, %127 : vector<8x96xf32>
    %130 = math.tanh %129 : vector<8x96xf32>
    %cst_33 = arith.constant 5.000000e-01 : f32
    %131 = vector.broadcast %cst_33 : f32 to vector<8x96xf32>
    %132 = arith.mulf %131, %130 : vector<8x96xf32>
    %cst_34 = arith.constant 5.000000e-01 : f32
    %133 = vector.broadcast %cst_34 : f32 to vector<8x96xf32>
    %134 = arith.addf %132, %133 : vector<8x96xf32>
    %135 = vector.extract_strided_slice %126 {offsets = [0, 96], sizes = [8, 32], strides = [1, 1]} : vector<8x128xf32> to vector<8x32xf32>
    %136 = math.tanh %135 : vector<8x32xf32>
    %137 = vector.extract_strided_slice %134 {offsets = [0, 32], sizes = [8, 32], strides = [1, 1]} : vector<8x96xf32> to vector<8x32xf32>
    %138 = arith.mulf %137, %96 : vector<8x32xf32>
    %139 = vector.extract_strided_slice %134 {offsets = [0, 0], sizes = [8, 32], strides = [1, 1]} : vector<8x96xf32> to vector<8x32xf32>
    %140 = arith.mulf %139, %136 : vector<8x32xf32>
    %141 = arith.addf %138, %140 : vector<8x32xf32>
    %142 = vector.extract_strided_slice %134 {offsets = [0, 64], sizes = [8, 32], strides = [1, 1]} : vector<8x96xf32> to vector<8x32xf32>
    %143 = math.tanh %141 : vector<8x32xf32>
    %144 = arith.mulf %142, %143 : vector<8x32xf32>
    %145 = vector.extract_strided_slice %123 {offsets = [0, 0], sizes = [8, 96], strides = [1, 1]} : vector<8x128xf32> to vector<8x96xf32>
    %cst_35 = arith.constant 5.000000e-01 : f32
    %146 = vector.broadcast %cst_35 : f32 to vector<8x96xf32>
    %147 = arith.mulf %146, %145 : vector<8x96xf32>
    %148 = math.tanh %147 : vector<8x96xf32>
    %cst_36 = arith.constant 5.000000e-01 : f32
    %149 = vector.broadcast %cst_36 : f32 to vector<8x96xf32>
    %150 = arith.mulf %149, %148 : vector<8x96xf32>
    %cst_37 = arith.constant 5.000000e-01 : f32
    %151 = vector.broadcast %cst_37 : f32 to vector<8x96xf32>
    %152 = arith.addf %150, %151 : vector<8x96xf32>
    %153 = vector.extract_strided_slice %123 {offsets = [0, 96], sizes = [8, 32], strides = [1, 1]} : vector<8x128xf32> to vector<8x32xf32>
    %154 = math.tanh %153 : vector<8x32xf32>
    %155 = vector.extract_strided_slice %152 {offsets = [0, 32], sizes = [8, 32], strides = [1, 1]} : vector<8x96xf32> to vector<8x32xf32>
    %156 = arith.mulf %155, %114 : vector<8x32xf32>
    %157 = vector.extract_strided_slice %152 {offsets = [0, 0], sizes = [8, 32], strides = [1, 1]} : vector<8x96xf32> to vector<8x32xf32>
    %158 = arith.mulf %157, %154 : vector<8x32xf32>
    %159 = arith.addf %156, %158 : vector<8x32xf32>
    %160 = vector.extract_strided_slice %152 {offsets = [0, 64], sizes = [8, 32], strides = [1, 1]} : vector<8x96xf32> to vector<8x32xf32>
    %161 = math.tanh %159 : vector<8x32xf32>
    %162 = arith.mulf %160, %161 : vector<8x32xf32>
    %c16 = arith.constant 16 : index
    %c0_38 = arith.constant 0 : index
    %163 = vector.load %arg9[%c16, %c0_38] : memref<64x32xf32, #tpu.memory_space<vmem>>, vector<8x32xf32>
    tpu.vector_store %arg9[%c16, %c0_38], %162 {strides = array<i32>} : memref<64x32xf32, #tpu.memory_space<vmem>>, vector<8x32xf32>,
    %164 = tpu.concatenate %144, %162 in 1 : vector<8x32xf32>, vector<8x32xf32> -> vector<8x64xf32>
    %cst_39 = arith.constant dense<0.000000e+00> : vector<8x256xf32>
    %165 = tpu.matmul %164, %7, %cst_39 {dimension_numbers = #tpu.dot_dimension_numbers<[1], [0], [0], [1], [0, 0, 1, 1], [], []>} : vector<8x64xf32>, vector<64x256xf32>, vector<8x256xf32> -> vector<8x256xf32>
    %166 = vector.extract_strided_slice %165 {offsets = [0, 128], sizes = [8, 128], strides = [1, 1]} : vector<8x256xf32> to vector<8x128xf32>
    %167 = vector.broadcast %8 : vector<1x128xf32> to vector<8x128xf32>
    %168 = arith.addf %166, %167 : vector<8x128xf32>
    %169 = vector.extract_strided_slice %6 {offsets = [32, 0], sizes = [8, 128], strides = [1, 1]} : vector<64x128xf32> to vector<8x128xf32>
    %170 = vector.extract_strided_slice %165 {offsets = [0, 0], sizes = [8, 128], strides = [1, 1]} : vector<8x256xf32> to vector<8x128xf32>
    %171 = arith.addf %169, %170 : vector<8x128xf32>
    %172 = vector.extract_strided_slice %171 {offsets = [0, 0], sizes = [8, 96], strides = [1, 1]} : vector<8x128xf32> to vector<8x96xf32>
    %cst_40 = arith.constant 5.000000e-01 : f32
    %173 = vector.broadcast %cst_40 : f32 to vector<8x96xf32>
    %174 = arith.mulf %173, %172 : vector<8x96xf32>
    %175 = math.tanh %174 : vector<8x96xf32>
    %cst_41 = arith.constant 5.000000e-01 : f32
    %176 = vector.broadcast %cst_41 : f32 to vector<8x96xf32>
    %177 = arith.mulf %176, %175 : vector<8x96xf32>
    %cst_42 = arith.constant 5.000000e-01 : f32
    %178 = vector.broadcast %cst_42 : f32 to vector<8x96xf32>
    %179 = arith.addf %177, %178 : vector<8x96xf32>
    %180 = vector.extract_strided_slice %171 {offsets = [0, 96], sizes = [8, 32], strides = [1, 1]} : vector<8x128xf32> to vector<8x32xf32>
    %181 = math.tanh %180 : vector<8x32xf32>
    %182 = vector.extract_strided_slice %179 {offsets = [0, 32], sizes = [8, 32], strides = [1, 1]} : vector<8x96xf32> to vector<8x32xf32>
    %183 = arith.mulf %182, %141 : vector<8x32xf32>
    %184 = vector.extract_strided_slice %179 {offsets = [0, 0], sizes = [8, 32], strides = [1, 1]} : vector<8x96xf32> to vector<8x32xf32>
    %185 = arith.mulf %184, %181 : vector<8x32xf32>
    %186 = arith.addf %183, %185 : vector<8x32xf32>
    %187 = vector.extract_strided_slice %179 {offsets = [0, 64], sizes = [8, 32], strides = [1, 1]} : vector<8x96xf32> to vector<8x32xf32>
    %188 = math.tanh %186 : vector<8x32xf32>
    %189 = arith.mulf %187, %188 : vector<8x32xf32>
    %190 = vector.extract_strided_slice %168 {offsets = [0, 0], sizes = [8, 96], strides = [1, 1]} : vector<8x128xf32> to vector<8x96xf32>
    %cst_43 = arith.constant 5.000000e-01 : f32
    %191 = vector.broadcast %cst_43 : f32 to vector<8x96xf32>
    %192 = arith.mulf %191, %190 : vector<8x96xf32>
    %193 = math.tanh %192 : vector<8x96xf32>
    %cst_44 = arith.constant 5.000000e-01 : f32
    %194 = vector.broadcast %cst_44 : f32 to vector<8x96xf32>
    %195 = arith.mulf %194, %193 : vector<8x96xf32>
    %cst_45 = arith.constant 5.000000e-01 : f32
    %196 = vector.broadcast %cst_45 : f32 to vector<8x96xf32>
    %197 = arith.addf %195, %196 : vector<8x96xf32>
    %198 = vector.extract_strided_slice %168 {offsets = [0, 96], sizes = [8, 32], strides = [1, 1]} : vector<8x128xf32> to vector<8x32xf32>
    %199 = math.tanh %198 : vector<8x32xf32>
    %200 = vector.extract_strided_slice %197 {offsets = [0, 32], sizes = [8, 32], strides = [1, 1]} : vector<8x96xf32> to vector<8x32xf32>
    %201 = arith.mulf %200, %159 : vector<8x32xf32>
    %202 = vector.extract_strided_slice %197 {offsets = [0, 0], sizes = [8, 32], strides = [1, 1]} : vector<8x96xf32> to vector<8x32xf32>
    %203 = arith.mulf %202, %199 : vector<8x32xf32>
    %204 = arith.addf %201, %203 : vector<8x32xf32>
    %205 = vector.extract_strided_slice %197 {offsets = [0, 64], sizes = [8, 32], strides = [1, 1]} : vector<8x96xf32> to vector<8x32xf32>
    %206 = math.tanh %204 : vector<8x32xf32>
    %207 = arith.mulf %205, %206 : vector<8x32xf32>
    %c24 = arith.constant 24 : index
    %c0_46 = arith.constant 0 : index
    %208 = vector.load %arg9[%c24, %c0_46] : memref<64x32xf32, #tpu.memory_space<vmem>>, vector<8x32xf32>
    tpu.vector_store %arg9[%c24, %c0_46], %207 {strides = array<i32>} : memref<64x32xf32, #tpu.memory_space<vmem>>, vector<8x32xf32>,
    %209 = tpu.concatenate %189, %207 in 1 : vector<8x32xf32>, vector<8x32xf32> -> vector<8x64xf32>
    %cst_47 = arith.constant dense<0.000000e+00> : vector<8x256xf32>
    %210 = tpu.matmul %209, %7, %cst_47 {dimension_numbers = #tpu.dot_dimension_numbers<[1], [0], [0], [1], [0, 0, 1, 1], [], []>} : vector<8x64xf32>, vector<64x256xf32>, vector<8x256xf32> -> vector<8x256xf32>
    %211 = vector.extract_strided_slice %210 {offsets = [0, 128], sizes = [8, 128], strides = [1, 1]} : vector<8x256xf32> to vector<8x128xf32>
    %212 = vector.broadcast %8 : vector<1x128xf32> to vector<8x128xf32>
    %213 = arith.addf %211, %212 : vector<8x128xf32>
    %214 = vector.extract_strided_slice %6 {offsets = [40, 0], sizes = [8, 128], strides = [1, 1]} : vector<64x128xf32> to vector<8x128xf32>
    %215 = vector.extract_strided_slice %210 {offsets = [0, 0], sizes = [8, 128], strides = [1, 1]} : vector<8x256xf32> to vector<8x128xf32>
    %216 = arith.addf %214, %215 : vector<8x128xf32>
    %217 = vector.extract_strided_slice %216 {offsets = [0, 0], sizes = [8, 96], strides = [1, 1]} : vector<8x128xf32> to vector<8x96xf32>
    %cst_48 = arith.constant 5.000000e-01 : f32
    %218 = vector.broadcast %cst_48 : f32 to vector<8x96xf32>
    %219 = arith.mulf %218, %217 : vector<8x96xf32>
    %220 = math.tanh %219 : vector<8x96xf32>
    %cst_49 = arith.constant 5.000000e-01 : f32
    %221 = vector.broadcast %cst_49 : f32 to vector<8x96xf32>
    %222 = arith.mulf %221, %220 : vector<8x96xf32>
    %cst_50 = arith.constant 5.000000e-01 : f32
    %223 = vector.broadcast %cst_50 : f32 to vector<8x96xf32>
    %224 = arith.addf %222, %223 : vector<8x96xf32>
    %225 = vector.extract_strided_slice %216 {offsets = [0, 96], sizes = [8, 32], strides = [1, 1]} : vector<8x128xf32> to vector<8x32xf32>
    %226 = math.tanh %225 : vector<8x32xf32>
    %227 = vector.extract_strided_slice %224 {offsets = [0, 32], sizes = [8, 32], strides = [1, 1]} : vector<8x96xf32> to vector<8x32xf32>
    %228 = arith.mulf %227, %186 : vector<8x32xf32>
    %229 = vector.extract_strided_slice %224 {offsets = [0, 0], sizes = [8, 32], strides = [1, 1]} : vector<8x96xf32> to vector<8x32xf32>
    %230 = arith.mulf %229, %226 : vector<8x32xf32>
    %231 = arith.addf %228, %230 : vector<8x32xf32>
    %232 = vector.extract_strided_slice %224 {offsets = [0, 64], sizes = [8, 32], strides = [1, 1]} : vector<8x96xf32> to vector<8x32xf32>
    %233 = math.tanh %231 : vector<8x32xf32>
    %234 = arith.mulf %232, %233 : vector<8x32xf32>
    %235 = vector.extract_strided_slice %213 {offsets = [0, 0], sizes = [8, 96], strides = [1, 1]} : vector<8x128xf32> to vector<8x96xf32>
    %cst_51 = arith.constant 5.000000e-01 : f32
    %236 = vector.broadcast %cst_51 : f32 to vector<8x96xf32>
    %237 = arith.mulf %236, %235 : vector<8x96xf32>
    %238 = math.tanh %237 : vector<8x96xf32>
    %cst_52 = arith.constant 5.000000e-01 : f32
    %239 = vector.broadcast %cst_52 : f32 to vector<8x96xf32>
    %240 = arith.mulf %239, %238 : vector<8x96xf32>
    %cst_53 = arith.constant 5.000000e-01 : f32
    %241 = vector.broadcast %cst_53 : f32 to vector<8x96xf32>
    %242 = arith.addf %240, %241 : vector<8x96xf32>
    %243 = vector.extract_strided_slice %213 {offsets = [0, 96], sizes = [8, 32], strides = [1, 1]} : vector<8x128xf32> to vector<8x32xf32>
    %244 = math.tanh %243 : vector<8x32xf32>
    %245 = vector.extract_strided_slice %242 {offsets = [0, 32], sizes = [8, 32], strides = [1, 1]} : vector<8x96xf32> to vector<8x32xf32>
    %246 = arith.mulf %245, %204 : vector<8x32xf32>
    %247 = vector.extract_strided_slice %242 {offsets = [0, 0], sizes = [8, 32], strides = [1, 1]} : vector<8x96xf32> to vector<8x32xf32>
    %248 = arith.mulf %247, %244 : vector<8x32xf32>
    %249 = arith.addf %246, %248 : vector<8x32xf32>
    %250 = vector.extract_strided_slice %242 {offsets = [0, 64], sizes = [8, 32], strides = [1, 1]} : vector<8x96xf32> to vector<8x32xf32>
    %251 = math.tanh %249 : vector<8x32xf32>
    %252 = arith.mulf %250, %251 : vector<8x32xf32>
    %c32 = arith.constant 32 : index
    %c0_54 = arith.constant 0 : index
    %253 = vector.load %arg9[%c32, %c0_54] : memref<64x32xf32, #tpu.memory_space<vmem>>, vector<8x32xf32>
    tpu.vector_store %arg9[%c32, %c0_54], %252 {strides = array<i32>} : memref<64x32xf32, #tpu.memory_space<vmem>>, vector<8x32xf32>,
    %254 = tpu.concatenate %234, %252 in 1 : vector<8x32xf32>, vector<8x32xf32> -> vector<8x64xf32>
    %cst_55 = arith.constant dense<0.000000e+00> : vector<8x256xf32>
    %255 = tpu.matmul %254, %7, %cst_55 {dimension_numbers = #tpu.dot_dimension_numbers<[1], [0], [0], [1], [0, 0, 1, 1], [], []>} : vector<8x64xf32>, vector<64x256xf32>, vector<8x256xf32> -> vector<8x256xf32>
    %256 = vector.extract_strided_slice %255 {offsets = [0, 128], sizes = [8, 128], strides = [1, 1]} : vector<8x256xf32> to vector<8x128xf32>
    %257 = vector.broadcast %8 : vector<1x128xf32> to vector<8x128xf32>
    %258 = arith.addf %256, %257 : vector<8x128xf32>
    %259 = vector.extract_strided_slice %6 {offsets = [48, 0], sizes = [8, 128], strides = [1, 1]} : vector<64x128xf32> to vector<8x128xf32>
    %260 = vector.extract_strided_slice %255 {offsets = [0, 0], sizes = [8, 128], strides = [1, 1]} : vector<8x256xf32> to vector<8x128xf32>
    %261 = arith.addf %259, %260 : vector<8x128xf32>
    %262 = vector.extract_strided_slice %261 {offsets = [0, 0], sizes = [8, 96], strides = [1, 1]} : vector<8x128xf32> to vector<8x96xf32>
    %cst_56 = arith.constant 5.000000e-01 : f32
    %263 = vector.broadcast %cst_56 : f32 to vector<8x96xf32>
    %264 = arith.mulf %263, %262 : vector<8x96xf32>
    %265 = math.tanh %264 : vector<8x96xf32>
    %cst_57 = arith.constant 5.000000e-01 : f32
    %266 = vector.broadcast %cst_57 : f32 to vector<8x96xf32>
    %267 = arith.mulf %266, %265 : vector<8x96xf32>
    %cst_58 = arith.constant 5.000000e-01 : f32
    %268 = vector.broadcast %cst_58 : f32 to vector<8x96xf32>
    %269 = arith.addf %267, %268 : vector<8x96xf32>
    %270 = vector.extract_strided_slice %261 {offsets = [0, 96], sizes = [8, 32], strides = [1, 1]} : vector<8x128xf32> to vector<8x32xf32>
    %271 = math.tanh %270 : vector<8x32xf32>
    %272 = vector.extract_strided_slice %269 {offsets = [0, 32], sizes = [8, 32], strides = [1, 1]} : vector<8x96xf32> to vector<8x32xf32>
    %273 = arith.mulf %272, %231 : vector<8x32xf32>
    %274 = vector.extract_strided_slice %269 {offsets = [0, 0], sizes = [8, 32], strides = [1, 1]} : vector<8x96xf32> to vector<8x32xf32>
    %275 = arith.mulf %274, %271 : vector<8x32xf32>
    %276 = arith.addf %273, %275 : vector<8x32xf32>
    %277 = vector.extract_strided_slice %269 {offsets = [0, 64], sizes = [8, 32], strides = [1, 1]} : vector<8x96xf32> to vector<8x32xf32>
    %278 = math.tanh %276 : vector<8x32xf32>
    %279 = arith.mulf %277, %278 : vector<8x32xf32>
    %280 = vector.extract_strided_slice %258 {offsets = [0, 0], sizes = [8, 96], strides = [1, 1]} : vector<8x128xf32> to vector<8x96xf32>
    %cst_59 = arith.constant 5.000000e-01 : f32
    %281 = vector.broadcast %cst_59 : f32 to vector<8x96xf32>
    %282 = arith.mulf %281, %280 : vector<8x96xf32>
    %283 = math.tanh %282 : vector<8x96xf32>
    %cst_60 = arith.constant 5.000000e-01 : f32
    %284 = vector.broadcast %cst_60 : f32 to vector<8x96xf32>
    %285 = arith.mulf %284, %283 : vector<8x96xf32>
    %cst_61 = arith.constant 5.000000e-01 : f32
    %286 = vector.broadcast %cst_61 : f32 to vector<8x96xf32>
    %287 = arith.addf %285, %286 : vector<8x96xf32>
    %288 = vector.extract_strided_slice %258 {offsets = [0, 96], sizes = [8, 32], strides = [1, 1]} : vector<8x128xf32> to vector<8x32xf32>
    %289 = math.tanh %288 : vector<8x32xf32>
    %290 = vector.extract_strided_slice %287 {offsets = [0, 32], sizes = [8, 32], strides = [1, 1]} : vector<8x96xf32> to vector<8x32xf32>
    %291 = arith.mulf %290, %249 : vector<8x32xf32>
    %292 = vector.extract_strided_slice %287 {offsets = [0, 0], sizes = [8, 32], strides = [1, 1]} : vector<8x96xf32> to vector<8x32xf32>
    %293 = arith.mulf %292, %289 : vector<8x32xf32>
    %294 = arith.addf %291, %293 : vector<8x32xf32>
    %295 = vector.extract_strided_slice %287 {offsets = [0, 64], sizes = [8, 32], strides = [1, 1]} : vector<8x96xf32> to vector<8x32xf32>
    %296 = math.tanh %294 : vector<8x32xf32>
    %297 = arith.mulf %295, %296 : vector<8x32xf32>
    %c40 = arith.constant 40 : index
    %c0_62 = arith.constant 0 : index
    %298 = vector.load %arg9[%c40, %c0_62] : memref<64x32xf32, #tpu.memory_space<vmem>>, vector<8x32xf32>
    tpu.vector_store %arg9[%c40, %c0_62], %297 {strides = array<i32>} : memref<64x32xf32, #tpu.memory_space<vmem>>, vector<8x32xf32>,
    %299 = tpu.concatenate %279, %297 in 1 : vector<8x32xf32>, vector<8x32xf32> -> vector<8x64xf32>
    %cst_63 = arith.constant dense<0.000000e+00> : vector<8x256xf32>
    %300 = tpu.matmul %299, %7, %cst_63 {dimension_numbers = #tpu.dot_dimension_numbers<[1], [0], [0], [1], [0, 0, 1, 1], [], []>} : vector<8x64xf32>, vector<64x256xf32>, vector<8x256xf32> -> vector<8x256xf32>
    %301 = vector.extract_strided_slice %300 {offsets = [0, 128], sizes = [8, 128], strides = [1, 1]} : vector<8x256xf32> to vector<8x128xf32>
    %302 = vector.broadcast %8 : vector<1x128xf32> to vector<8x128xf32>
    %303 = arith.addf %301, %302 : vector<8x128xf32>
    %304 = vector.extract_strided_slice %6 {offsets = [56, 0], sizes = [8, 128], strides = [1, 1]} : vector<64x128xf32> to vector<8x128xf32>
    %305 = vector.extract_strided_slice %300 {offsets = [0, 0], sizes = [8, 128], strides = [1, 1]} : vector<8x256xf32> to vector<8x128xf32>
    %306 = arith.addf %304, %305 : vector<8x128xf32>
    %307 = vector.extract_strided_slice %306 {offsets = [0, 0], sizes = [8, 96], strides = [1, 1]} : vector<8x128xf32> to vector<8x96xf32>
    %cst_64 = arith.constant 5.000000e-01 : f32
    %308 = vector.broadcast %cst_64 : f32 to vector<8x96xf32>
    %309 = arith.mulf %308, %307 : vector<8x96xf32>
    %310 = math.tanh %309 : vector<8x96xf32>
    %cst_65 = arith.constant 5.000000e-01 : f32
    %311 = vector.broadcast %cst_65 : f32 to vector<8x96xf32>
    %312 = arith.mulf %311, %310 : vector<8x96xf32>
    %cst_66 = arith.constant 5.000000e-01 : f32
    %313 = vector.broadcast %cst_66 : f32 to vector<8x96xf32>
    %314 = arith.addf %312, %313 : vector<8x96xf32>
    %315 = vector.extract_strided_slice %306 {offsets = [0, 96], sizes = [8, 32], strides = [1, 1]} : vector<8x128xf32> to vector<8x32xf32>
    %316 = math.tanh %315 : vector<8x32xf32>
    %317 = vector.extract_strided_slice %314 {offsets = [0, 32], sizes = [8, 32], strides = [1, 1]} : vector<8x96xf32> to vector<8x32xf32>
    %318 = arith.mulf %317, %276 : vector<8x32xf32>
    %319 = vector.extract_strided_slice %314 {offsets = [0, 0], sizes = [8, 32], strides = [1, 1]} : vector<8x96xf32> to vector<8x32xf32>
    %320 = arith.mulf %319, %316 : vector<8x32xf32>
    %321 = arith.addf %318, %320 : vector<8x32xf32>
    %322 = vector.extract_strided_slice %314 {offsets = [0, 64], sizes = [8, 32], strides = [1, 1]} : vector<8x96xf32> to vector<8x32xf32>
    %323 = math.tanh %321 : vector<8x32xf32>
    %324 = arith.mulf %322, %323 : vector<8x32xf32>
    %325 = vector.extract_strided_slice %303 {offsets = [0, 0], sizes = [8, 96], strides = [1, 1]} : vector<8x128xf32> to vector<8x96xf32>
    %cst_67 = arith.constant 5.000000e-01 : f32
    %326 = vector.broadcast %cst_67 : f32 to vector<8x96xf32>
    %327 = arith.mulf %326, %325 : vector<8x96xf32>
    %328 = math.tanh %327 : vector<8x96xf32>
    %cst_68 = arith.constant 5.000000e-01 : f32
    %329 = vector.broadcast %cst_68 : f32 to vector<8x96xf32>
    %330 = arith.mulf %329, %328 : vector<8x96xf32>
    %cst_69 = arith.constant 5.000000e-01 : f32
    %331 = vector.broadcast %cst_69 : f32 to vector<8x96xf32>
    %332 = arith.addf %330, %331 : vector<8x96xf32>
    %333 = vector.extract_strided_slice %303 {offsets = [0, 96], sizes = [8, 32], strides = [1, 1]} : vector<8x128xf32> to vector<8x32xf32>
    %334 = math.tanh %333 : vector<8x32xf32>
    %335 = vector.extract_strided_slice %332 {offsets = [0, 32], sizes = [8, 32], strides = [1, 1]} : vector<8x96xf32> to vector<8x32xf32>
    %336 = arith.mulf %335, %294 : vector<8x32xf32>
    %337 = vector.extract_strided_slice %332 {offsets = [0, 0], sizes = [8, 32], strides = [1, 1]} : vector<8x96xf32> to vector<8x32xf32>
    %338 = arith.mulf %337, %334 : vector<8x32xf32>
    %339 = arith.addf %336, %338 : vector<8x32xf32>
    %340 = vector.extract_strided_slice %332 {offsets = [0, 64], sizes = [8, 32], strides = [1, 1]} : vector<8x96xf32> to vector<8x32xf32>
    %341 = math.tanh %339 : vector<8x32xf32>
    %342 = arith.mulf %340, %341 : vector<8x32xf32>
    %c48 = arith.constant 48 : index
    %c0_70 = arith.constant 0 : index
    %343 = vector.load %arg9[%c48, %c0_70] : memref<64x32xf32, #tpu.memory_space<vmem>>, vector<8x32xf32>
    tpu.vector_store %arg9[%c48, %c0_70], %342 {strides = array<i32>} : memref<64x32xf32, #tpu.memory_space<vmem>>, vector<8x32xf32>,
    %344 = tpu.concatenate %324, %342 in 1 : vector<8x32xf32>, vector<8x32xf32> -> vector<8x64xf32>
    %cst_71 = arith.constant dense<0.000000e+00> : vector<8x256xf32>
    %345 = tpu.matmul %344, %7, %cst_71 {dimension_numbers = #tpu.dot_dimension_numbers<[1], [0], [0], [1], [0, 0, 1, 1], [], []>} : vector<8x64xf32>, vector<64x256xf32>, vector<8x256xf32> -> vector<8x256xf32>
    %346 = vector.extract_strided_slice %345 {offsets = [0, 128], sizes = [8, 128], strides = [1, 1]} : vector<8x256xf32> to vector<8x128xf32>
    %347 = vector.broadcast %8 : vector<1x128xf32> to vector<8x128xf32>
    %348 = arith.addf %346, %347 : vector<8x128xf32>
    %349 = vector.extract_strided_slice %348 {offsets = [0, 0], sizes = [8, 96], strides = [1, 1]} : vector<8x128xf32> to vector<8x96xf32>
    %cst_72 = arith.constant 5.000000e-01 : f32
    %350 = vector.broadcast %cst_72 : f32 to vector<8x96xf32>
    %351 = arith.mulf %350, %349 : vector<8x96xf32>
    %352 = math.tanh %351 : vector<8x96xf32>
    %cst_73 = arith.constant 5.000000e-01 : f32
    %353 = vector.broadcast %cst_73 : f32 to vector<8x96xf32>
    %354 = arith.mulf %353, %352 : vector<8x96xf32>
    %cst_74 = arith.constant 5.000000e-01 : f32
    %355 = vector.broadcast %cst_74 : f32 to vector<8x96xf32>
    %356 = arith.addf %354, %355 : vector<8x96xf32>
    %357 = vector.extract_strided_slice %348 {offsets = [0, 96], sizes = [8, 32], strides = [1, 1]} : vector<8x128xf32> to vector<8x32xf32>
    %358 = math.tanh %357 : vector<8x32xf32>
    %359 = vector.extract_strided_slice %356 {offsets = [0, 32], sizes = [8, 32], strides = [1, 1]} : vector<8x96xf32> to vector<8x32xf32>
    %360 = arith.mulf %359, %339 : vector<8x32xf32>
    %361 = vector.extract_strided_slice %356 {offsets = [0, 0], sizes = [8, 32], strides = [1, 1]} : vector<8x96xf32> to vector<8x32xf32>
    %362 = arith.mulf %361, %358 : vector<8x32xf32>
    %363 = arith.addf %360, %362 : vector<8x32xf32>
    %364 = vector.extract_strided_slice %356 {offsets = [0, 64], sizes = [8, 32], strides = [1, 1]} : vector<8x96xf32> to vector<8x32xf32>
    %365 = math.tanh %363 : vector<8x32xf32>
    %366 = arith.mulf %364, %365 : vector<8x32xf32>
    %c56 = arith.constant 56 : index
    %c0_75 = arith.constant 0 : index
    %367 = vector.load %arg9[%c56, %c0_75] : memref<64x32xf32, #tpu.memory_space<vmem>>, vector<8x32xf32>
    tpu.vector_store %arg9[%c56, %c0_75], %366 {strides = array<i32>} : memref<64x32xf32, #tpu.memory_space<vmem>>, vector<8x32xf32>,
    %c0_76 = arith.constant 0 : index
    %c0_77 = arith.constant 0 : index
    %368 = vector.load %arg9[%c0_76, %c0_77] : memref<64x32xf32, #tpu.memory_space<vmem>>, vector<64x32xf32>
    %c0_78 = arith.constant 0 : index
    %c0_79 = arith.constant 0 : index
    %369 = vector.load %arg6[%c0_78, %c0_79] : memref<32x128xf32, #tpu.memory_space<vmem>>, vector<32x128xf32>
    %cst_80 = arith.constant dense<0.000000e+00> : vector<64x128xf32>
    %370 = tpu.matmul %368, %369, %cst_80 {dimension_numbers = #tpu.dot_dimension_numbers<[1], [0], [0], [1], [0, 0, 1, 1], [], []>} : vector<64x32xf32>, vector<32x128xf32>, vector<64x128xf32> -> vector<64x128xf32>
    %c0_81 = arith.constant 0 : index
    %c0_82 = arith.constant 0 : index
    %371 = vector.load %arg7[%c0_81, %c0_82] : memref<1x128xf32, #tpu.memory_space<vmem>>, vector<1x128xf32>
    %372 = vector.broadcast %371 : vector<1x128xf32> to vector<64x128xf32>
    %373 = arith.addf %370, %372 : vector<64x128xf32>
    %c0_83 = arith.constant 0 : index
    %c0_84 = arith.constant 0 : index
    %c0_85 = arith.constant 0 : index
    %374 = vector.load %arg8[%c0_83, %c0_84, %c0_85] : memref<1x64x128xf32, #tpu.memory_space<vmem>>, vector<1x64x128xf32>
    %375 = vector.shape_cast %374 : vector<1x64x128xf32> to vector<64x128xf32>
    %376 = vector.shape_cast %373 : vector<64x128xf32> to vector<1x64x128xf32>
    tpu.vector_store %arg8[%c0_83, %c0_84, %c0_85], %376 {strides = array<i32>} : memref<1x64x128xf32, #tpu.memory_space<vmem>>, vector<1x64x128xf32>,
    return
  }
  func.func @transform_0(%arg0: i32) -> (i32, i32, i32) {
    %c0_i32 = arith.constant 0 : i32
    %c0_i32_0 = arith.constant 0 : i32
    %c0_i32_1 = arith.constant 0 : i32
    return %arg0, %c0_i32, %c0_i32_0 : i32, i32, i32
  }
  func.func @transform_1(%arg0: i32) -> (i32, i32) {
    %c0_i32 = arith.constant 0 : i32
    %c0_i32_0 = arith.constant 0 : i32
    %c0_i32_1 = arith.constant 0 : i32
    return %c0_i32, %c0_i32_0 : i32, i32
  }
  func.func @transform_2(%arg0: i32) -> (i32, i32) {
    %c0_i32 = arith.constant 0 : i32
    %c0_i32_0 = arith.constant 0 : i32
    %c0_i32_1 = arith.constant 0 : i32
    return %c0_i32, %c0_i32_0 : i32, i32
  }
  func.func @transform_3(%arg0: i32) -> (i32, i32) {
    %c0_i32 = arith.constant 0 : i32
    %c0_i32_0 = arith.constant 0 : i32
    %c0_i32_1 = arith.constant 0 : i32
    return %c0_i32, %c0_i32_0 : i32, i32
  }
  func.func @transform_4(%arg0: i32) -> (i32, i32) {
    %c0_i32 = arith.constant 0 : i32
    %c0_i32_0 = arith.constant 0 : i32
    %c0_i32_1 = arith.constant 0 : i32
    return %c0_i32, %c0_i32_0 : i32, i32
  }
  func.func @transform_5(%arg0: i32) -> (i32, i32) {
    %c0_i32 = arith.constant 0 : i32
    %c0_i32_0 = arith.constant 0 : i32
    %c0_i32_1 = arith.constant 0 : i32
    return %c0_i32, %c0_i32_0 : i32, i32
  }
  func.func @transform_6(%arg0: i32) -> (i32, i32) {
    %c0_i32 = arith.constant 0 : i32
    %c0_i32_0 = arith.constant 0 : i32
    %c0_i32_1 = arith.constant 0 : i32
    return %c0_i32, %c0_i32_0 : i32, i32
  }
  func.func @transform_7(%arg0: i32) -> (i32, i32, i32) {
    %c0_i32 = arith.constant 0 : i32
    %c0_i32_0 = arith.constant 0 : i32
    %c0_i32_1 = arith.constant 0 : i32
    return %arg0, %c0_i32, %c0_i32_0 : i32, i32, i32
  }
}

</mosaic_0001>

<bundles_post_ra>
// kernel: tpu_custom_call.1
= control target key start
LH: loop header
LB: loop body
LE: loop exit
PB: predicated region body
PF: predicated region fallthrough
CT: control target
= control target key end

     0   :  { %12 = vsyncpa [#allocation4], 0  ;;  %s2389_s0 = inlined_call_operand.hbm [shape: f32[1,64,64], index: 0, kind: input, shape index: {}]   ;;  %s2390_s1 = inlined_call_operand.hbm [shape: f32[64,128], index: 1, kind: input, shape index: {}]   ;;  %s2391_s2 = inlined_call_operand.vmem [shape: f32[1,128], index: 2, kind: input, shape index: {}]   ;;  %s2392_s3 = inlined_call_operand.hbm [shape: f32[64,256], index: 3, kind: input, shape index: {}]   ;;  %s2393_s4 = inlined_call_operand.vmem [shape: f32[1,128], index: 4, kind: input, shape index: {}]   ;;  %s2394_s5 = inlined_call_operand.hbm [shape: f32[32,128], index: 5, kind: input, shape index: {}]   ;;  %s2395_s6 = inlined_call_operand.vmem [shape: f32[1,128], index: 6, kind: input, shape index: {}]   ;;  %s2396_s7 = inlined_call_operand.hbm [shape: f32[1,64,128], index: 7, kind: output, shape index: {}]  }
   0x1   :  { %13 = vsyncpa [#allocation7], 0 }
   0x2   :  { %14 = vsyncpa [#allocation10], 0 }
   0x3   :  { %15 = vsyncpa [#allocation5], 0  ;;  %s1975_s24 = smov [#allocation6]   ;;  %s1976_s26 = smov [#allocation3]  }
   0x4   :  { %s33_s25 = sshll.u32 %s1975_s24, 4  ;;  %s21_s27 = sshll.u32 %s1976_s26, 4  ;;  %s34_s25 = int_to_ptr.vmem [resolvable:$true] %s33_s25  ;;  %s2028_s27 = int_to_ptr.vmem [resolvable:$true] %s21_s27 }
   0x5   :  { %s1857_s30 = scalar_lea.hbm %s2390_s1, 1024 }
   0x6   :  { %p1858_p0 = scmp.ne.s32.totalorder %s2390_s1, %s1857_s30  ;;  %p1861_p1 = scmp.lt.u32.totalorder %s1857_s30, %s2390_s1 }
   0x8   :  { %p1863_p2 = pnand %p1861_p1, %p1858_p0 }
   0xa   :  { %1866 = shalt.err (!%p1863_p2)
}
   0xb   :  { %s1867_s12 = scalar_lea.vmem %s34_s25, 1024  ;;  %p1872_p4 = scmp.lt.s32.totalorder %s34_s25, %s34_s25 }
   0xc   :  { %p1868_p3 = scmp.ne.s32.totalorder %s34_s25, %s1867_s12  ;;  %p1873_p5 = scmp.lt.s32.totalorder %s1867_s12, %s1867_s12 }
   0xe   :  { %p1874_p6 = por %p1873_p5, %p1872_p4 }
  0x10   :  { %p1875_p7 = pnand %p1874_p6, %p1868_p3 }
  0x12   :  { %1878 = shalt.err (!%p1875_p7)
}
  0x13   :  { %s1977_s13 = smov 128   ;;  %s1978_s14 = smov 8  }
  0x14   :  { %39 = dma.hbm_to_vmem [thread:$0]  %s2390_s1, 1024, %s34_s25, [#allocation7], %s1977_s13, %s1977_s13, %s1978_s14  }
  0x15   :  { %s1879_s19 = scalar_lea.hbm %s2389_s0, 1024 }
  0x16   :  { %p1880_p8 = scmp.ne.s32.totalorder %s2389_s0, %s1879_s19  ;;  %p1883_p9 = scmp.lt.u32.totalorder %s1879_s19, %s2389_s0 }
  0x18   :  { %p1885_p10 = pnand %p1883_p9, %p1880_p8 }
  0x1a   :  { %1888 = shalt.err (!%p1885_p10)
}
  0x1b   :  { %s1889_s24 = scalar_lea.vmem %s2028_s27, 1024  ;;  %p1894_p12 = scmp.lt.s32.totalorder %s2028_s27, %s2028_s27 }
  0x1c   :  { %p1890_p11 = scmp.ne.s32.totalorder %s2028_s27, %s1889_s24  ;;  %p1895_p13 = scmp.lt.s32.totalorder %s1889_s24, %s1889_s24 }
  0x1e   :  { %p1896_p0 = por %p1895_p13, %p1894_p12 }
  0x20   :  { %p1897_p1 = pnand %p1896_p0, %p1890_p11 }
  0x22   :  { %1900 = shalt.err (!%p1897_p1)
}
  0x23   :  { %27 = dma.hbm_to_vmem [thread:$0]  %s2389_s0, 1024, %s2028_s27, [#allocation4], %s1977_s13, %s1977_s13, %s1978_s14  }
  0x24   :  { %s1979_s26 = smov [#allocation8]   ;;  %s1901_s8 = scalar_lea.hbm %s2392_s3, 2048 }
  0x25   :  { %s47_s28 = sshll.u32 %s1979_s26, 4  ;;  %p1902_p2 = scmp.ne.s32.totalorder %s2392_s3, %s1901_s8  ;;  %s48_s28 = int_to_ptr.vmem [resolvable:$true] %s47_s28 }
  0x26   :  { %p1905_p3 = scmp.lt.u32.totalorder %s1901_s8, %s2392_s3 }
  0x28   :  { %p1907_p4 = pnand %p1905_p3, %p1902_p2 }
  0x2a   :  { %1910 = shalt.err (!%p1907_p4)
}
  0x2b   :  { %s1911_s15 = scalar_lea.vmem %s48_s28, 2048  ;;  %p1916_p6 = scmp.lt.s32.totalorder %s48_s28, %s48_s28 }
  0x2c   :  { %p1912_p5 = scmp.ne.s32.totalorder %s48_s28, %s1911_s15  ;;  %p1917_p7 = scmp.lt.s32.totalorder %s1911_s15, %s1911_s15 }
  0x2e   :  { %p1918_p8 = por %p1917_p7, %p1916_p6 }
  0x30   :  { %p1919_p9 = pnand %p1918_p8, %p1912_p5 }
  0x32   :  { %1922 = shalt.err (!%p1919_p9)
}
  0x33   :  { %s1980_s0 = smov 256   ;;  %s1981_s27 = smov 16  }
  0x34   :  { %53 = dma.hbm_to_vmem [thread:$0]  %s2392_s3, 2048, %s48_s28, [#allocation7], %s1980_s0, %s1980_s0, %s1981_s27  }
  0x35   :  { %s1982_s18 = smov [#allocation9]   ;;  %s1923_s22 = scalar_lea.hbm %s2394_s5, 512 }
  0x36   :  { %s61_s19 = sshll.u32 %s1982_s18, 4  ;;  %p1924_p10 = scmp.ne.s32.totalorder %s2394_s5, %s1923_s22  ;;  %s62_s19 = int_to_ptr.vmem [resolvable:$true] %s61_s19 }
  0x37   :  { %p1927_p11 = scmp.lt.u32.totalorder %s1923_s22, %s2394_s5 }
  0x39   :  { %p1929_p12 = pnand %p1927_p11, %p1924_p10 }
  0x3b   :  { %1932 = shalt.err (!%p1929_p12)
}
  0x3c   :  { %s1933_s26 = scalar_lea.vmem %s62_s19, 512  ;;  %p1938_p0 = scmp.lt.s32.totalorder %s62_s19, %s62_s19 }
  0x3d   :  { %p1934_p13 = scmp.ne.s32.totalorder %s62_s19, %s1933_s26  ;;  %p1939_p1 = scmp.lt.s32.totalorder %s1933_s26, %s1933_s26 }
  0x3f   :  { %p1940_p2 = por %p1939_p1, %p1938_p0 }
  0x41   :  { %p1941_p3 = pnand %p1940_p2, %p1934_p13 }
  0x43   :  { %1944 = shalt.err (!%p1941_p3)
}
  0x44   :  { %67 = dma.hbm_to_vmem [thread:$0]  %s2394_s5, 512, %s62_s19, [#allocation10], %s1977_s13, %s1977_s13, %s1978_s14  }
  0x45   :  { %1967 = dma.done.wait [#allocation4], 1024  }
  0x46   :  { %1968 = vsyncadd [#allocation4], 4294966272 }
  0x47   :  { %1969 = dma.done.wait [#allocation7], 3072  }
  0x48   :  { %1970 = vsyncadd [#allocation7], 4294964224 }
  0x49   :  { %1971 = dma.done.wait [#allocation10], 512  }
  0x4a   :  { %1972 = vsyncadd [#allocation10], 4294966784  ;;  %v90_v0 = vld [vmem:[#allocation6] sm:$0xff]  ;;  %v91_v1 = vld [vmem:[#allocation6 + $0x8] sm:$0xff]  ;;  %vm105_vm0 = vcmask 523264   ;;  %s1983_s30 = smov 32  }
  0x4b   :  { %v92_v2 = vld [vmem:[#allocation6 + $0x10] sm:$0xff]  ;;  %v1596_v3 = vpack.c.bf16 %v91_v1, %v90_v0  ;;  %v93_v4 = vld [vmem:[#allocation6 + $0x18] sm:$0xff]  ;;  %v94_v6 = vld [vmem:[#allocation6 + $0x20] sm:$0xff]  ;;  %v1984_v53 = vmov 0.0   ;;  %vm278_vm1 = vcmask 261120   ;;  %s1987_s12 = smov [#allocation11]  }
  0x4c   :  { %v1600_v5 = vpack.c.bf16 %v93_v4, %v92_v2  ;;  %v95_v7 = vld [vmem:[#allocation6 + $0x28] sm:$0xff]  ;;  %v82_v8 = vld [vmem:[#allocation3] sm:$0xff]  ;;  %v96_v10 = vld [vmem:[#allocation6 + $0x30] sm:$0xff]  ;;  %347 = vmatprep.mubr.f32.mxu1 %v1984_v53 }
  0x4d   :  { %1597 = vmatprep.subr.bf16.mxu0 %v1596_v3  ;;  %1564 = vmatprep.mubr.msk.f32.mxu0 %vm105_vm0, %v82_v8  ;;  %v1604_v9 = vpack.c.bf16 %v95_v7, %v94_v6  ;;  %v97_v11 = vld [vmem:[#allocation6 + $0x38] sm:$0xff]  ;;  %v83_v13 = vld [vmem:[#allocation3 + $0x8] sm:$0xff]  ;;  %v2097_v14 = vld [vmem:[%s2391_s2] ss:$0 sm:$0xff]  ;;  %s1985_s2 = smov 64  }
  0x4e   :  { %1599 = vmatpush3.bf16.msra.mxu0 %v1596_v3  ;;  %v1608_v12 = vpack.c.bf16 %v97_v11, %v96_v10  ;;  %v236_v28 = vld [vmem:[#allocation8 + $0x8] sm:$0xff]  ;;  %v238_v29 = vld [vmem:[#allocation8 + $0x18] sm:$0xff]  ;;  %v235_v30 = vld [vmem:[#allocation8] sm:$0xff] }
  0x4f   :  { %1601 = vmatprep.subr.bf16.mxu0 %v1600_v5  ;;  %v2107_v31 = vpack.c.bf16 %v238_v29, %v236_v28  ;;  %v237_v32 = vld [vmem:[#allocation8 + $0x10] sm:$0xff]  ;;  %v240_v33 = vld [vmem:[#allocation8 + $0x28] sm:$0xff]  ;;  %v242_v34 = vld [vmem:[#allocation8 + $0x38] sm:$0xff] }
  0x50   :  { %v2109_v35 = vpack.c.bf16 %v237_v32, %v235_v30  ;;  %v2111_v36 = vpack.c.bf16 %v242_v34, %v240_v33  ;;  %v239_v37 = vld [vmem:[#allocation8 + $0x20] sm:$0xff]  ;;  %v241_v38 = vld [vmem:[#allocation8 + $0x30] sm:$0xff]  ;;  %v244_v39 = vld [vmem:[#allocation8 + $0x48] sm:$0xff] }
  0x51   :  { %1613 = vmatprep.subr.bf16.mxu1 %v2107_v31  ;;  %v246_v40 = vld [vmem:[#allocation8 + $0x58] sm:$0xff]  ;;  %v2116_v41 = vpack.c.bf16 %v241_v38, %v239_v37  ;;  %v243_v43 = vld [vmem:[#allocation8 + $0x40] sm:$0xff]  ;;  %v245_v44 = vld [vmem:[#allocation8 + $0x50] sm:$0xff] }
  0x52   :  { %1603 = vmatpush3.bf16.msra.mxu0 %v1600_v5  ;;  %1615 = vmatpush1.bf16.msra.mxu1 %v2109_v35  ;;  %v2120_v42 = vpack.c.bf16 %v246_v40, %v244_v39  ;;  %v248_v45 = vld [vmem:[#allocation8 + $0x68] sm:$0xff]  ;;  %v250_v46 = vld [vmem:[#allocation8 + $0x78] sm:$0xff]  ;;  %v2124_v47 = vpack.c.bf16 %v245_v44, %v243_v43  ;;  %v247_v49 = vld [vmem:[#allocation8 + $0x60] sm:$0xff] }
  0x53   :  { %1605 = vmatprep.subr.bf16.mxu0 %v1604_v9  ;;  %1617 = vmatprep.subr.bf16.mxu1 %v2111_v36  ;;  %v2128_v48 = vpack.c.bf16 %v250_v46, %v248_v45  ;;  %v249_v50 = vld [vmem:[#allocation8 + $0x70] sm:$0xff]  ;;  %v2160_v59 = vld [vmem:[%s2393_s4] ss:$0 sm:$0xff]  ;;  %s1986_s4 = smov 96  }
  0x54   :  { %v2133_v52 = vpack.c.bf16 %v249_v50, %v247_v49 }
  0x56   :  { %1607 = vmatpush3.bf16.msra.mxu0 %v1604_v9  ;;  %1619 = vmatpush1.bf16.msra.mxu1 %v2116_v41 }
  0x57   :  { %1609 = vmatprep.subr.bf16.mxu0 %v1608_v12  ;;  %1621 = vmatprep.subr.bf16.mxu1 %v2120_v42 }
  0x5a   :  { %1611 = vmatpush3.bf16.msra.mxu0 %v1608_v12  ;;  %1623 = vmatpush1.bf16.msra.mxu1 %v2124_v47 }
  0x5b   :  { %1629 = vmatprep.subr.bf16.mxu0 %v2107_v31  ;;  %1625 = vmatprep.subr.bf16.mxu1 %v2128_v48 }
  0x5d   :  { %1565 = vmatmul.mubr.msk.f32.vlgmr.msra.gmra.mrb[0].mxu0 %vm105_vm0, %v83_v13 }
  0x5e   :  { %1631 = vmatpush1.bf16.msra.mxu0 %v2109_v35  ;;  %1627 = vmatpush1.bf16.msra.mxu1 %v2133_v52 }
  0x5f   :  { %1633 = vmatprep.subr.bf16.mxu0 %v2111_v36  ;;  %1645 = vmatprep.subr.bf16.mxu1 %v2107_v31 }
  0x62   :  { %1635 = vmatpush1.bf16.msra.mxu0 %v2116_v41 }
  0x63   :  { %1637 = vmatprep.subr.bf16.mxu0 %v2120_v42 }
  0x66   :  { %1639 = vmatpush1.bf16.msra.mxu0 %v2124_v47 }
  0x67   :  { %1641 = vmatprep.subr.bf16.mxu0 %v2128_v48 }
  0x6a   :  { %1643 = vmatpush1.bf16.msra.mxu0 %v2133_v52 }
  0x6b   :  { %1661 = vmatprep.subr.bf16.mxu0 %v2107_v31 }
 0x130   :  { %v2099_v15 = vpop.f32.mrb[0].mxu0 }
 0x131   :  { %v196_v16 = vpop.f32.mrb[1].mxu0  ;;  %v202_v58 = vadd.f32 %v2099_v15, %v2097_v14 }
 0x132   :  { %v197_v17 = vadd.f32 %v2097_v14, %v196_v16 }
 0x134   :  { %1761 = vtanh.f32 %v197_v17  ;;  %v252_v19 = vmul.f32 0.5, %v197_v17 }
 0x136   :  { %1763 = vtanh.f32 %v252_v19 }
 0x13e   :  { %v1762_v18 = vpop.eup %1761 }
 0x13f   :  { %259 = vrot.lane.b32.xlu0 %v1762_v18, %s1983_s30 }
 0x140   :  { %v1764_v20 = vpop.eup %1763 }
 0x141   :  { %v254_v21 = vmul.f32 0.5, %v1764_v20 }
 0x143   :  { %v255_v22 = vadd.f32 0.5, %v254_v21  ;;  %v84_v21 = vld [vmem:[#allocation3 + $0x10] sm:$0xff] }
 0x144   :  { %1567 = vmatprep.mubr.msk.f32.mxu0 %vm105_vm0, %v84_v21 }
 0x145   :  { %v257_v25 = vmul.f32 0.0, %v255_v22 }
 0x1b1   :  { %v260_v23 = vpop.permute.xlu0 %259 }
 0x1b2   :  { %v262_v24 = vmul.f32 %v260_v23, %v255_v22  ;;  %v86_v23 = vld [vmem:[#allocation3 + $0x20] sm:$0xff] }
 0x1b4   :  { %264 = vrot.lane.b32.xlu0 %v262_v24, %s1983_s30  ;;  %v87_v24 = vld [vmem:[#allocation3 + $0x28] sm:$0xff] }
 0x226   :  { %v265_v26 = vpop.permute.xlu0 %264 }
 0x227   :  { %v2104_v27 = vadd.f32 %v265_v26, %v257_v25  ;;  %v88_v25 = vld [vmem:[#allocation3 + $0x30] sm:$0xff]  ;;  %v89_v26 = vld [vmem:[#allocation3 + $0x38] sm:$0xff] }
 0x229   :  { %1765 = vtanh.f32 %v2104_v27 }
 0x233   :  { %v1766_v51 = vpop.eup %1765 }
 0x234   :  { %270 = vrot.lane.b32.xlu1 %v1766_v51, %s1983_s30 }
 0x2a6   :  { %v271_v54 = vpop.permute.xlu1 %270 }
 0x2a7   :  { %v273_v55 = vmul.f32 %v271_v54, %v255_v22  ;;  %v85_v22 = vld [vmem:[#allocation3 + $0x18] sm:$0xff] }
 0x2a8   :  { %1568 = vmatmul.mubr.msk.f32.gmra.mrb[2].mxu0 %vm105_vm0, %v85_v22 }
 0x2a9   :  { %275 = vrot.lane.b32.xlu1 %v273_v55, %s1985_s2  ;;  %1570 = vmatprep.mubr.msk.f32.mxu0 %vm105_vm0, %v86_v23 }
 0x2ac   :  { %1571 = vmatmul.mubr.msk.f32.gmra.mrb[4].mxu0 %vm105_vm0, %v87_v24 }
 0x2ad   :  { %1573 = vmatprep.mubr.msk.f32.mxu0 %vm105_vm0, %v88_v25 }
 0x2b0   :  { %1574 = vmatmul.mubr.msk.f32.gmra.mrb[6].mxu0 %vm105_vm0, %v89_v26 }
 0x2b1   :  { %486 = vmatprep.mubr.f32.mxu0 %v1984_v53 }
 0x31b   :  { %v276_v56 = vpop.permute.xlu1 %275 }
 0x31c   :  { %v279_v57 = vsel %vm278_vm1, %v276_v56, 0.0 }
 0x31d   :  { %1502 = vmatmul.mubr.msk.f32.vlgmr.msra.gmra.mrb[0].mxu1 %vm105_vm0, %v279_v57 }
 0x31e   :  { %1647 = vmatpush1.bf16.msra.mxu1 %v2109_v35  ;;  %619 = vmatprep.mubr.f32.mxu1 %v1984_v53 }
 0x31f   :  { %1649 = vmatprep.subr.bf16.mxu1 %v2111_v36 }
 0x322   :  { %1651 = vmatpush1.bf16.msra.mxu1 %v2116_v41 }
 0x323   :  { %1653 = vmatprep.subr.bf16.mxu1 %v2120_v42 }
 0x326   :  { %1655 = vmatpush1.bf16.msra.mxu1 %v2124_v47 }
 0x327   :  { %1657 = vmatprep.subr.bf16.mxu1 %v2128_v48 }
 0x32a   :  { %1659 = vmatpush1.bf16.msra.mxu1 %v2133_v52 }
 0x32b   :  { %1677 = vmatprep.subr.bf16.mxu1 %v2107_v31 }
 0x37b   :  { %v2188_v34 = vpop.f32.mrb[2].mxu0 }
 0x37c   :  { %v206_v37 = vpop.f32.mrb[3].mxu0  ;;  %v212_v23 = vadd.f32 %v2188_v34, %v2097_v14 }
 0x37d   :  { %v207_v49 = vadd.f32 %v2097_v14, %v206_v37 }
 0x37f   :  { %v2190_v38 = vpop.f32.mrb[4].mxu0 }
 0x380   :  { %v2192_v39 = vpop.f32.mrb[5].mxu0 }
 0x383   :  { %v2194_v40 = vpop.f32.mrb[6].mxu0 }
 0x384   :  { %v2196_v43 = vpop.f32.mrb[7].mxu0 }
 0x3f0   :  { %v349_v60 = vpop.f32.mrb[0].mxu1 }
 0x3f1   :  { %v361_v61 = vadd.f32 %v349_v60, %v202_v58  ;;  %v351_v62 = vpop.f32.mrb[1].mxu1 }
 0x3f2   :  { %v360_v63 = vadd.f32 %v2160_v59, %v351_v62 }
 0x3f3   :  { %1767 = vtanh.f32 %v361_v61  ;;  %v362_v2 = vmul.f32 0.5, %v361_v61 }
 0x3f4   :  { %1769 = vtanh.f32 %v360_v63  ;;  %v384_v3 = vmul.f32 0.5, %v360_v63 }
 0x3f5   :  { %1771 = vtanh.f32 %v362_v2 }
 0x3f6   :  { %1773 = vtanh.f32 %v384_v3 }
 0x3fd   :  { %v1768_v0 = vpop.eup %1767 }
 0x3fe   :  { %v1770_v1 = vpop.eup %1769  ;;  %369 = vrot.lane.b32.xlu0 %v1768_v0, %s1983_s30 }
 0x3ff   :  { %391 = vrot.lane.b32.xlu1 %v1770_v1, %s1983_s30  ;;  %v1772_v4 = vpop.eup %1771 }
 0x400   :  { %v1774_v5 = vpop.eup %1773  ;;  %v364_v6 = vmul.f32 0.5, %v1772_v4 }
 0x401   :  { %v386_v7 = vmul.f32 0.5, %v1774_v5 }
 0x402   :  { %v365_v8 = vadd.f32 0.5, %v364_v6 }
 0x403   :  { %v387_v10 = vadd.f32 0.5, %v386_v7 }
 0x404   :  { %v367_v15 = vmul.f32 %v365_v8, %v2104_v27 }
 0x405   :  { %v389_v17 = vmul.f32 0.0, %v387_v10 }
 0x470   :  { %v370_v9 = vpop.permute.xlu0 %369 }
 0x471   :  { %v372_v11 = vmul.f32 %v370_v9, %v365_v8  ;;  %v392_v12 = vpop.permute.xlu1 %391 }
 0x472   :  { %v394_v13 = vmul.f32 %v392_v12, %v387_v10 }
 0x473   :  { %374 = vrot.lane.b32.xlu0 %v372_v11, %s1983_s30 }
 0x474   :  { %396 = vrot.lane.b32.xlu1 %v394_v13, %s1983_s30 }
 0x4e5   :  { %v375_v16 = vpop.permute.xlu0 %374 }
 0x4e6   :  { %v2168_v18 = vadd.f32 %v375_v16, %v367_v15  ;;  %v397_v19 = vpop.permute.xlu1 %396 }
 0x4e7   :  { %v2170_v20 = vadd.f32 %v397_v19, %v389_v17 }
 0x4e8   :  { %1775 = vtanh.f32 %v2168_v18 }
 0x4e9   :  { %1777 = vtanh.f32 %v2170_v20 }
 0x4f2   :  { %v1776_v27 = vpop.eup %1775 }
 0x4f3   :  { %v1778_v28 = vpop.eup %1777  ;;  %380 = vrot.lane.b32.xlu0 %v1776_v27, %s1983_s30 }
 0x4f4   :  { %402 = vrot.lane.b32.xlu1 %v1778_v28, %s1983_s30 }
 0x565   :  { %v381_v29 = vpop.permute.xlu0 %380 }
 0x566   :  { %v383_v30 = vmul.f32 %v381_v29, %v365_v8  ;;  %v403_v32 = vpop.permute.xlu1 %402 }
 0x567   :  { %v2183_v33 = vmul.f32 %v403_v32, %v387_v10 }
 0x568   :  { %412 = vrot.lane.b32.xlu0 %v383_v30, %s1985_s2 }
 0x569   :  { %415 = vrot.lane.b32.xlu1 %v2183_v33, %s1986_s4 }
 0x5da   :  { %v413_v44 = vpop.permute.xlu0 %412 }
 0x5db   :  { %v416_v45 = vpop.permute.xlu1 %415 }
 0x5dc   :  { %v418_v46 = vsel %vm278_vm1, %v413_v44, %v416_v45 }
 0x5dd   :  { %1504 = vmatmul.mubr.msk.f32.vlgmr.msra.gmra.mrb[8].mxu0 %vm105_vm0, %v418_v46 }
 0x5de   :  { %1663 = vmatpush1.bf16.msra.mxu0 %v2109_v35  ;;  %752 = vmatprep.mubr.f32.mxu0 %v1984_v53 }
 0x5df   :  { %1665 = vmatprep.subr.bf16.mxu0 %v2111_v36 }
 0x5e2   :  { %1667 = vmatpush1.bf16.msra.mxu0 %v2116_v41 }
 0x5e3   :  { %1669 = vmatprep.subr.bf16.mxu0 %v2120_v42 }
 0x5e6   :  { %1671 = vmatpush1.bf16.msra.mxu0 %v2124_v47 }
 0x5e7   :  { %1673 = vmatprep.subr.bf16.mxu0 %v2128_v48 }
 0x5ea   :  { %1675 = vmatpush1.bf16.msra.mxu0 %v2133_v52 }
 0x5eb   :  { %1693 = vmatprep.subr.bf16.mxu0 %v2107_v31 }
 0x6b0   :  { %v488_v50 = vpop.f32.mrb[8].mxu0 }
 0x6b1   :  { %v494_v51 = vadd.f32 %v488_v50, %v207_v49  ;;  %v490_v54 = vpop.f32.mrb[9].mxu0 }
 0x6b2   :  { %v493_v55 = vadd.f32 %v2160_v59, %v490_v54 }
 0x6b3   :  { %1779 = vtanh.f32 %v494_v51  ;;  %v495_v58 = vmul.f32 0.5, %v494_v51 }
 0x6b4   :  { %1781 = vtanh.f32 %v493_v55  ;;  %v517_v60 = vmul.f32 0.5, %v493_v55 }
 0x6b5   :  { %1783 = vtanh.f32 %v495_v58 }
 0x6b6   :  { %1785 = vtanh.f32 %v517_v60 }
 0x6bd   :  { %v1780_v56 = vpop.eup %1779 }
 0x6be   :  { %v1782_v57 = vpop.eup %1781  ;;  %502 = vrot.lane.b32.xlu0 %v1780_v56, %s1983_s30 }
 0x6bf   :  { %524 = vrot.lane.b32.xlu1 %v1782_v57, %s1983_s30  ;;  %v1784_v61 = vpop.eup %1783 }
 0x6c0   :  { %v1786_v62 = vpop.eup %1785  ;;  %v497_v63 = vmul.f32 0.5, %v1784_v61 }
 0x6c1   :  { %v519_v0 = vmul.f32 0.5, %v1786_v62 }
 0x6c2   :  { %v498_v1 = vadd.f32 0.5, %v497_v63 }
 0x6c3   :  { %v520_v3 = vadd.f32 0.5, %v519_v0 }
 0x6c4   :  { %v500_v7 = vmul.f32 %v498_v1, %v2168_v18 }
 0x6c5   :  { %v522_v9 = vmul.f32 %v520_v3, %v2170_v20 }
 0x730   :  { %v503_v2 = vpop.permute.xlu0 %502 }
 0x731   :  { %v505_v4 = vmul.f32 %v503_v2, %v498_v1  ;;  %v525_v5 = vpop.permute.xlu1 %524 }
 0x732   :  { %v527_v6 = vmul.f32 %v525_v5, %v520_v3 }
 0x733   :  { %507 = vrot.lane.b32.xlu0 %v505_v4, %s1983_s30 }
 0x734   :  { %529 = vrot.lane.b32.xlu1 %v527_v6, %s1983_s30 }
 0x7a5   :  { %v508_v8 = vpop.permute.xlu0 %507 }
 0x7a6   :  { %v510_v10 = vadd.f32 %v508_v8, %v500_v7  ;;  %v530_v11 = vpop.permute.xlu1 %529  ;;  %v217_v8 = vadd.f32 %v2097_v14, %v2192_v39 }
 0x7a7   :  { %v532_v12 = vadd.f32 %v530_v11, %v522_v9 }
 0x7a8   :  { %1787 = vtanh.f32 %v510_v10 }
 0x7a9   :  { %1789 = vtanh.f32 %v532_v12 }
 0x7b2   :  { %v1788_v13 = vpop.eup %1787 }
 0x7b3   :  { %v1790_v15 = vpop.eup %1789  ;;  %513 = vrot.lane.b32.xlu0 %v1788_v13, %s1983_s30 }
 0x7b4   :  { %535 = vrot.lane.b32.xlu1 %v1790_v15, %s1983_s30 }
 0x825   :  { %v514_v16 = vpop.permute.xlu0 %513 }
 0x826   :  { %v516_v17 = vmul.f32 %v514_v16, %v498_v1  ;;  %v536_v19 = vpop.permute.xlu1 %535 }
 0x827   :  { %v2219_v21 = vmul.f32 %v536_v19, %v520_v3 }
 0x828   :  { %545 = vrot.lane.b32.xlu0 %v516_v17, %s1985_s2 }
 0x829   :  { %548 = vrot.lane.b32.xlu1 %v2219_v21, %s1986_s4 }
 0x89a   :  { %v546_v18 = vpop.permute.xlu0 %545 }
 0x89b   :  { %v549_v20 = vpop.permute.xlu1 %548 }
 0x89c   :  { %v551_v22 = vsel %vm278_vm1, %v546_v18, %v549_v20 }
 0x89d   :  { %1505 = vmatmul.mubr.msk.f32.vlgmr.msra.gmra.mrb[2].mxu1 %vm105_vm0, %v551_v22 }
 0x89e   :  { %1679 = vmatpush1.bf16.msra.mxu1 %v2109_v35  ;;  %885 = vmatprep.mubr.f32.mxu1 %v1984_v53 }
 0x89f   :  { %1681 = vmatprep.subr.bf16.mxu1 %v2111_v36 }
 0x8a2   :  { %1683 = vmatpush1.bf16.msra.mxu1 %v2116_v41 }
 0x8a3   :  { %1685 = vmatprep.subr.bf16.mxu1 %v2120_v42 }
 0x8a6   :  { %1687 = vmatpush1.bf16.msra.mxu1 %v2124_v47 }
 0x8a7   :  { %1689 = vmatprep.subr.bf16.mxu1 %v2128_v48 }
 0x8aa   :  { %1691 = vmatpush1.bf16.msra.mxu1 %v2133_v52 }
 0x8ab   :  { %1709 = vmatprep.subr.bf16.mxu1 %v2107_v31 }
 0x970   :  { %v621_v24 = vpop.f32.mrb[2].mxu1 }
 0x971   :  { %v627_v25 = vadd.f32 %v621_v24, %v212_v23  ;;  %v623_v26 = vpop.f32.mrb[3].mxu1 }
 0x972   :  { %v626_v27 = vadd.f32 %v2160_v59, %v623_v26 }
 0x973   :  { %1791 = vtanh.f32 %v627_v25  ;;  %v628_v30 = vmul.f32 0.5, %v627_v25 }
 0x974   :  { %1793 = vtanh.f32 %v626_v27  ;;  %v650_v32 = vmul.f32 0.5, %v626_v27 }
 0x975   :  { %1795 = vtanh.f32 %v628_v30 }
 0x976   :  { %1797 = vtanh.f32 %v650_v32 }
 0x97d   :  { %v1792_v28 = vpop.eup %1791 }
 0x97e   :  { %v1794_v29 = vpop.eup %1793  ;;  %635 = vrot.lane.b32.xlu0 %v1792_v28, %s1983_s30 }
 0x97f   :  { %657 = vrot.lane.b32.xlu1 %v1794_v29, %s1983_s30  ;;  %v1796_v37 = vpop.eup %1795 }
 0x980   :  { %v1798_v44 = vpop.eup %1797  ;;  %v630_v34 = vmul.f32 0.5, %v1796_v37 }
 0x981   :  { %v652_v45 = vmul.f32 0.5, %v1798_v44 }
 0x982   :  { %v631_v46 = vadd.f32 0.5, %v630_v34 }
 0x983   :  { %v653_v50 = vadd.f32 0.5, %v652_v45 }
 0x984   :  { %v633_v56 = vmul.f32 %v631_v46, %v510_v10 }
 0x985   :  { %v655_v58 = vmul.f32 %v653_v50, %v532_v12 }
 0x9f0   :  { %v636_v49 = vpop.permute.xlu0 %635 }
 0x9f1   :  { %v638_v51 = vmul.f32 %v636_v49, %v631_v46  ;;  %v658_v54 = vpop.permute.xlu1 %657 }
 0x9f2   :  { %v660_v55 = vmul.f32 %v658_v54, %v653_v50 }
 0x9f3   :  { %640 = vrot.lane.b32.xlu0 %v638_v51, %s1983_s30 }
 0x9f4   :  { %662 = vrot.lane.b32.xlu1 %v660_v55, %s1983_s30 }
 0xa65   :  { %v641_v57 = vpop.permute.xlu0 %640 }
 0xa66   :  { %v643_v60 = vadd.f32 %v641_v57, %v633_v56  ;;  %v663_v61 = vpop.permute.xlu1 %662  ;;  %v222_v56 = vadd.f32 %v2190_v38, %v2097_v14 }
 0xa67   :  { %v665_v62 = vadd.f32 %v663_v61, %v655_v58 }
 0xa68   :  { %1799 = vtanh.f32 %v643_v60 }
 0xa69   :  { %1801 = vtanh.f32 %v665_v62 }
 0xa72   :  { %v1800_v63 = vpop.eup %1799 }
 0xa73   :  { %v1802_v0 = vpop.eup %1801  ;;  %646 = vrot.lane.b32.xlu0 %v1800_v63, %s1983_s30 }
 0xa74   :  { %668 = vrot.lane.b32.xlu1 %v1802_v0, %s1983_s30 }
 0xae5   :  { %v647_v1 = vpop.permute.xlu0 %646 }
 0xae6   :  { %v649_v2 = vmul.f32 %v647_v1, %v631_v46  ;;  %v669_v3 = vpop.permute.xlu1 %668 }
 0xae7   :  { %v2244_v4 = vmul.f32 %v669_v3, %v653_v50 }
 0xae8   :  { %678 = vrot.lane.b32.xlu0 %v649_v2, %s1985_s2 }
 0xae9   :  { %681 = vrot.lane.b32.xlu1 %v2244_v4, %s1986_s4 }
 0xb5a   :  { %v679_v5 = vpop.permute.xlu0 %678 }
 0xb5b   :  { %v682_v6 = vpop.permute.xlu1 %681 }
 0xb5c   :  { %v684_v7 = vsel %vm278_vm1, %v679_v5, %v682_v6 }
 0xb5d   :  { %1506 = vmatmul.mubr.msk.f32.vlgmr.msra.gmra.mrb[10].mxu0 %vm105_vm0, %v684_v7 }
 0xb5e   :  { %1695 = vmatpush1.bf16.msra.mxu0 %v2109_v35  ;;  %1018 = vmatprep.mubr.f32.mxu0 %v1984_v53 }
 0xb5f   :  { %1697 = vmatprep.subr.bf16.mxu0 %v2111_v36 }
 0xb62   :  { %1699 = vmatpush1.bf16.msra.mxu0 %v2116_v41 }
 0xb63   :  { %1701 = vmatprep.subr.bf16.mxu0 %v2120_v42 }
 0xb66   :  { %1703 = vmatpush1.bf16.msra.mxu0 %v2124_v47 }
 0xb67   :  { %1705 = vmatprep.subr.bf16.mxu0 %v2128_v48 }
 0xb6a   :  { %1707 = vmatpush1.bf16.msra.mxu0 %v2133_v52 }
 0xb6b   :  { %1725 = vmatprep.subr.bf16.mxu0 %v2107_v31 }
 0xc30   :  { %v754_v9 = vpop.f32.mrb[10].mxu0 }
 0xc31   :  { %v760_v10 = vadd.f32 %v754_v9, %v217_v8  ;;  %v756_v11 = vpop.f32.mrb[11].mxu0 }
 0xc32   :  { %v759_v12 = vadd.f32 %v2160_v59, %v756_v11 }
 0xc33   :  { %1803 = vtanh.f32 %v760_v10  ;;  %v761_v16 = vmul.f32 0.5, %v760_v10 }
 0xc34   :  { %1805 = vtanh.f32 %v759_v12  ;;  %v783_v17 = vmul.f32 0.5, %v759_v12 }
 0xc35   :  { %1807 = vtanh.f32 %v761_v16 }
 0xc36   :  { %1809 = vtanh.f32 %v783_v17 }
 0xc3d   :  { %v1804_v13 = vpop.eup %1803 }
 0xc3e   :  { %v1806_v15 = vpop.eup %1805  ;;  %768 = vrot.lane.b32.xlu0 %v1804_v13, %s1983_s30 }
 0xc3f   :  { %790 = vrot.lane.b32.xlu1 %v1806_v15, %s1983_s30  ;;  %v1808_v31 = vpop.eup %1807 }
 0xc40   :  { %v1810_v19 = vpop.eup %1809  ;;  %v763_v39 = vmul.f32 0.5, %v1808_v31 }
 0xc41   :  { %v785_v18 = vmul.f32 0.5, %v1810_v19 }
 0xc42   :  { %v764_v20 = vadd.f32 0.5, %v763_v39 }
 0xc43   :  { %v786_v23 = vadd.f32 0.5, %v785_v18 }
 0xc44   :  { %v766_v27 = vmul.f32 %v764_v20, %v643_v60 }
 0xc45   :  { %v788_v29 = vmul.f32 %v786_v23, %v665_v62 }
 0xcb0   :  { %v769_v22 = vpop.permute.xlu0 %768 }
 0xcb1   :  { %v771_v24 = vmul.f32 %v769_v22, %v764_v20  ;;  %v791_v25 = vpop.permute.xlu1 %790 }
 0xcb2   :  { %v793_v26 = vmul.f32 %v791_v25, %v786_v23 }
 0xcb3   :  { %773 = vrot.lane.b32.xlu0 %v771_v24, %s1983_s30 }
 0xcb4   :  { %795 = vrot.lane.b32.xlu1 %v793_v26, %s1983_s30 }
 0xd25   :  { %v774_v28 = vpop.permute.xlu0 %773 }
 0xd26   :  { %v776_v30 = vadd.f32 %v774_v28, %v766_v27  ;;  %v796_v32 = vpop.permute.xlu1 %795  ;;  %v227_v27 = vadd.f32 %v2097_v14, %v2196_v43 }
 0xd27   :  { %v798_v37 = vadd.f32 %v796_v32, %v788_v29 }
 0xd28   :  { %1811 = vtanh.f32 %v776_v30 }
 0xd29   :  { %1813 = vtanh.f32 %v798_v37 }
 0xd32   :  { %v1812_v44 = vpop.eup %1811 }
 0xd33   :  { %v1814_v34 = vpop.eup %1813  ;;  %779 = vrot.lane.b32.xlu0 %v1812_v44, %s1983_s30 }
 0xd34   :  { %801 = vrot.lane.b32.xlu1 %v1814_v34, %s1983_s30 }
 0xda5   :  { %v780_v45 = vpop.permute.xlu0 %779 }
 0xda6   :  { %v782_v46 = vmul.f32 %v780_v45, %v764_v20  ;;  %v802_v49 = vpop.permute.xlu1 %801 }
 0xda7   :  { %v2269_v50 = vmul.f32 %v802_v49, %v786_v23 }
 0xda8   :  { %811 = vrot.lane.b32.xlu0 %v782_v46, %s1985_s2 }
 0xda9   :  { %814 = vrot.lane.b32.xlu1 %v2269_v50, %s1986_s4 }
 0xe1a   :  { %v812_v51 = vpop.permute.xlu0 %811 }
 0xe1b   :  { %v815_v54 = vpop.permute.xlu1 %814 }
 0xe1c   :  { %v817_v55 = vsel %vm278_vm1, %v812_v51, %v815_v54 }
 0xe1d   :  { %1507 = vmatmul.mubr.msk.f32.vlgmr.msra.gmra.mrb[4].mxu1 %vm105_vm0, %v817_v55 }
 0xe1e   :  { %1711 = vmatpush1.bf16.msra.mxu1 %v2109_v35  ;;  %1151 = vmatprep.mubr.f32.mxu1 %v1984_v53 }
 0xe1f   :  { %1713 = vmatprep.subr.bf16.mxu1 %v2111_v36 }
 0xe22   :  { %1715 = vmatpush1.bf16.msra.mxu1 %v2116_v41 }
 0xe23   :  { %1717 = vmatprep.subr.bf16.mxu1 %v2120_v42 }
 0xe26   :  { %1719 = vmatpush1.bf16.msra.mxu1 %v2124_v47 }
 0xe27   :  { %1721 = vmatprep.subr.bf16.mxu1 %v2128_v48 }
 0xe2a   :  { %1723 = vmatpush1.bf16.msra.mxu1 %v2133_v52 }
 0xef0   :  { %v887_v57 = vpop.f32.mrb[4].mxu1 }
 0xef1   :  { %v893_v58 = vadd.f32 %v887_v57, %v222_v56  ;;  %v889_v60 = vpop.f32.mrb[5].mxu1 }
 0xef2   :  { %v892_v61 = vadd.f32 %v2160_v59, %v889_v60 }
 0xef3   :  { %1815 = vtanh.f32 %v893_v58  ;;  %v894_v0 = vmul.f32 0.5, %v893_v58 }
 0xef4   :  { %1817 = vtanh.f32 %v892_v61  ;;  %v916_v1 = vmul.f32 0.5, %v892_v61 }
 0xef5   :  { %1819 = vtanh.f32 %v894_v0 }
 0xef6   :  { %1821 = vtanh.f32 %v916_v1 }
 0xefd   :  { %v1816_v62 = vpop.eup %1815 }
 0xefe   :  { %v1818_v63 = vpop.eup %1817  ;;  %901 = vrot.lane.b32.xlu0 %v1816_v62, %s1983_s30 }
 0xeff   :  { %923 = vrot.lane.b32.xlu1 %v1818_v63, %s1983_s30  ;;  %v1820_v2 = vpop.eup %1819 }
 0xf00   :  { %v1822_v3 = vpop.eup %1821  ;;  %v896_v38 = vmul.f32 0.5, %v1820_v2 }
 0xf01   :  { %v918_v5 = vmul.f32 0.5, %v1822_v3 }
 0xf02   :  { %v897_v6 = vadd.f32 0.5, %v896_v38  ;;  %v232_v38 = vadd.f32 %v2194_v40, %v2097_v14 }
 0xf03   :  { %v919_v8 = vadd.f32 0.5, %v918_v5 }
 0xf04   :  { %v899_v12 = vmul.f32 %v897_v6, %v776_v30 }
 0xf05   :  { %v921_v15 = vmul.f32 %v919_v8, %v798_v37 }
 0xf70   :  { %v902_v7 = vpop.permute.xlu0 %901 }
 0xf71   :  { %v904_v9 = vmul.f32 %v902_v7, %v897_v6  ;;  %v924_v10 = vpop.permute.xlu1 %923 }
 0xf72   :  { %v926_v11 = vmul.f32 %v924_v10, %v919_v8 }
 0xf73   :  { %906 = vrot.lane.b32.xlu0 %v904_v9, %s1983_s30 }
 0xf74   :  { %928 = vrot.lane.b32.xlu1 %v926_v11, %s1983_s30 }
 0xfe5   :  { %v907_v13 = vpop.permute.xlu0 %906 }
 0xfe6   :  { %v909_v16 = vadd.f32 %v907_v13, %v899_v12  ;;  %v929_v17 = vpop.permute.xlu1 %928 }
 0xfe7   :  { %v931_v31 = vadd.f32 %v929_v17, %v921_v15 }
 0xfe8   :  { %1823 = vtanh.f32 %v909_v16 }
 0xfe9   :  { %1825 = vtanh.f32 %v931_v31 }
 0xff2   :  { %v1824_v19 = vpop.eup %1823 }
 0xff3   :  { %v1826_v39 = vpop.eup %1825  ;;  %912 = vrot.lane.b32.xlu0 %v1824_v19, %s1983_s30 }
 0xff4   :  { %934 = vrot.lane.b32.xlu1 %v1826_v39, %s1983_s30 }
0x1065   :  { %v913_v18 = vpop.permute.xlu0 %912 }
0x1066   :  { %v915_v20 = vmul.f32 %v913_v18, %v897_v6  ;;  %v935_v22 = vpop.permute.xlu1 %934 }
0x1067   :  { %v2293_v23 = vmul.f32 %v935_v22, %v919_v8 }
0x1068   :  { %944 = vrot.lane.b32.xlu0 %v915_v20, %s1985_s2 }
0x1069   :  { %947 = vrot.lane.b32.xlu1 %v2293_v23, %s1986_s4 }
0x10da   :  { %v945_v24 = vpop.permute.xlu0 %944 }
0x10db   :  { %v948_v25 = vpop.permute.xlu1 %947 }
0x10dc   :  { %v950_v26 = vsel %vm278_vm1, %v945_v24, %v948_v25 }
0x10dd   :  { %1508 = vmatmul.mubr.msk.f32.vlgmr.msra.gmra.mrb[12].mxu0 %vm105_vm0, %v950_v26 }
0x10de   :  { %1727 = vmatpush1.bf16.msra.mxu0 %v2109_v35  ;;  %1284 = vmatprep.mubr.f32.mxu0 %v1984_v53 }
0x10df   :  { %1729 = vmatprep.subr.bf16.mxu0 %v2111_v36 }
0x10e2   :  { %1731 = vmatpush1.bf16.msra.mxu0 %v2116_v41 }
0x10e3   :  { %1733 = vmatprep.subr.bf16.mxu0 %v2120_v42 }
0x10e6   :  { %1735 = vmatpush1.bf16.msra.mxu0 %v2124_v47 }
0x10e7   :  { %1737 = vmatprep.subr.bf16.mxu0 %v2128_v48 }
0x10ea   :  { %1739 = vmatpush1.bf16.msra.mxu0 %v2133_v52 }
0x11b0   :  { %v1020_v28 = vpop.f32.mrb[12].mxu0 }
0x11b1   :  { %v1026_v29 = vadd.f32 %v1020_v28, %v227_v27  ;;  %v1022_v35 = vpop.f32.mrb[13].mxu0 }
0x11b2   :  { %v1025_v53 = vadd.f32 %v2160_v59, %v1022_v35 }
0x11b3   :  { %1827 = vtanh.f32 %v1026_v29  ;;  %v1027_v42 = vmul.f32 0.5, %v1026_v29 }
0x11b4   :  { %1829 = vtanh.f32 %v1025_v53  ;;  %v1049_v47 = vmul.f32 0.5, %v1025_v53 }
0x11b5   :  { %1831 = vtanh.f32 %v1027_v42 }
0x11b6   :  { %1833 = vtanh.f32 %v1049_v47 }
0x11bd   :  { %v1828_v36 = vpop.eup %1827 }
0x11be   :  { %v1830_v41 = vpop.eup %1829  ;;  %1034 = vrot.lane.b32.xlu0 %v1828_v36, %s1983_s30 }
0x11bf   :  { %1056 = vrot.lane.b32.xlu1 %v1830_v41, %s1983_s30  ;;  %v1832_v48 = vpop.eup %1831 }
0x11c0   :  { %v1834_v52 = vpop.eup %1833  ;;  %v1029_v43 = vmul.f32 0.5, %v1832_v48 }
0x11c1   :  { %v1051_v30 = vmul.f32 0.5, %v1834_v52 }
0x11c2   :  { %v1030_v32 = vadd.f32 0.5, %v1029_v43 }
0x11c3   :  { %v1052_v44 = vadd.f32 0.5, %v1051_v30 }
0x11c4   :  { %v1032_v49 = vmul.f32 %v1030_v32, %v909_v16 }
0x11c5   :  { %v1054_v54 = vmul.f32 %v1052_v44, %v931_v31 }
0x1230   :  { %v1035_v37 = vpop.permute.xlu0 %1034 }
0x1231   :  { %v1037_v34 = vmul.f32 %v1035_v37, %v1030_v32  ;;  %v1057_v45 = vpop.permute.xlu1 %1056 }
0x1232   :  { %v1059_v46 = vmul.f32 %v1057_v45, %v1052_v44 }
0x1233   :  { %1039 = vrot.lane.b32.xlu0 %v1037_v34, %s1983_s30 }
0x1234   :  { %1061 = vrot.lane.b32.xlu1 %v1059_v46, %s1983_s30 }
0x12a5   :  { %v1040_v51 = vpop.permute.xlu0 %1039 }
0x12a6   :  { %v1042_v55 = vadd.f32 %v1040_v51, %v1032_v49  ;;  %v1062_v56 = vpop.permute.xlu1 %1061 }
0x12a7   :  { %v1064_v57 = vadd.f32 %v1062_v56, %v1054_v54  ;;  %v1327_v56 = vld [vmem:[#allocation9 + $0x8] sm:$0xff] }
0x12a8   :  { %1835 = vtanh.f32 %v1042_v55 }
0x12a9   :  { %1837 = vtanh.f32 %v1064_v57 }
0x12b2   :  { %v1836_v58 = vpop.eup %1835 }
0x12b3   :  { %v1838_v60 = vpop.eup %1837  ;;  %1045 = vrot.lane.b32.xlu0 %v1836_v58, %s1983_s30 }
0x12b4   :  { %1067 = vrot.lane.b32.xlu1 %v1838_v60, %s1983_s30  ;;  %v1329_v60 = vld [vmem:[#allocation9 + $0x18] sm:$0xff] }
0x1325   :  { %v1046_v61 = vpop.permute.xlu0 %1045 }
0x1326   :  { %v1048_v62 = vmul.f32 %v1046_v61, %v1030_v32  ;;  %v1068_v63 = vpop.permute.xlu1 %1067 }
0x1327   :  { %v2317_v0 = vmul.f32 %v1068_v63, %v1052_v44 }
0x1328   :  { %1077 = vrot.lane.b32.xlu0 %v1048_v62, %s1985_s2 }
0x1329   :  { %1080 = vrot.lane.b32.xlu1 %v2317_v0, %s1986_s4 }
0x139a   :  { %v1078_v1 = vpop.permute.xlu0 %1077 }
0x139b   :  { %v1081_v2 = vpop.permute.xlu1 %1080 }
0x139c   :  { %v1083_v3 = vsel %vm278_vm1, %v1078_v1, %v1081_v2 }
0x139d   :  { %1509 = vmatmul.mubr.msk.f32.vlgmr.msra.gmra.mrb[6].mxu1 %vm105_vm0, %v1083_v3 }
0x1470   :  { %v1153_v5 = vpop.f32.mrb[6].mxu1 }
0x1471   :  { %v1159_v6 = vadd.f32 %v1153_v5, %v232_v38  ;;  %v1155_v7 = vpop.f32.mrb[7].mxu1 }
0x1472   :  { %v1158_v8 = vadd.f32 %v2160_v59, %v1155_v7 }
0x1473   :  { %1839 = vtanh.f32 %v1159_v6  ;;  %v1160_v11 = vmul.f32 0.5, %v1159_v6 }
0x1474   :  { %1841 = vtanh.f32 %v1158_v8  ;;  %v1182_v12 = vmul.f32 0.5, %v1158_v8 }
0x1475   :  { %1843 = vtanh.f32 %v1160_v11 }
0x1476   :  { %1845 = vtanh.f32 %v1182_v12  ;;  %v1511_v12 = vld [vmem:[%s2395_s6] ss:$0 sm:$0xff]  ;;  %s1479_s6 = sshll.u32 %s1987_s12, 4  ;;  %s1480_s6 = int_to_ptr.vmem [resolvable:$true] %s1479_s6 }
0x1477   :  { %s1945_s15 = scalar_lea.vmem %s1480_s6, 1024  ;;  %p1950_p5 = scmp.lt.s32.totalorder %s1480_s6, %s1480_s6 }
0x1478   :  { %p1946_p4 = scmp.ne.s32.totalorder %s1480_s6, %s1945_s15  ;;  %p1951_p6 = scmp.lt.s32.totalorder %s1945_s15, %s1945_s15 }
0x147a   :  { %p1952_p7 = por %p1951_p6, %p1950_p5 }
0x147c   :  { %p1953_p8 = pnand %p1952_p7, %p1946_p4 }
0x147d   :  { %v1840_v9 = vpop.eup %1839 }
0x147e   :  { %v1842_v10 = vpop.eup %1841  ;;  %1167 = vrot.lane.b32.xlu0 %v1840_v9, %s1983_s30 }
0x147f   :  { %1189 = vrot.lane.b32.xlu1 %v1842_v10, %s1983_s30  ;;  %v1844_v13 = vpop.eup %1843 }
0x1480   :  { %v1846_v15 = vpop.eup %1845  ;;  %v1162_v14 = vmul.f32 0.5, %v1844_v13 }
0x1481   :  { %v1184_v40 = vmul.f32 0.5, %v1846_v15 }
0x1482   :  { %v1163_v16 = vadd.f32 0.5, %v1162_v14 }
0x1483   :  { %v1185_v31 = vadd.f32 0.5, %v1184_v40 }
0x1484   :  { %v1165_v20 = vmul.f32 %v1163_v16, %v1042_v55  ;;  %v1326_v55 = vld [vmem:[#allocation9] sm:$0xff] }
0x1485   :  { %v1187_v24 = vmul.f32 %v1185_v31, %v1064_v57  ;;  %v1740_v57 = vpack.c.bf16 %v1327_v56, %v1326_v55 }
0x1487   :  { %1741 = vmatprep.subr.bf16.mxu1 %v1740_v57 }
0x1488   :  { %1743 = vmatpush3.bf16.msra.mxu1 %v1740_v57 }
0x14f0   :  { %v1168_v17 = vpop.permute.xlu0 %1167 }
0x14f1   :  { %v1170_v19 = vmul.f32 %v1168_v17, %v1163_v16  ;;  %v1190_v39 = vpop.permute.xlu1 %1189 }
0x14f2   :  { %v1192_v18 = vmul.f32 %v1190_v39, %v1185_v31 }
0x14f3   :  { %1172 = vrot.lane.b32.xlu0 %v1170_v19, %s1983_s30 }
0x14f4   :  { %1194 = vrot.lane.b32.xlu1 %v1192_v18, %s1983_s30 }
0x1565   :  { %v1173_v22 = vpop.permute.xlu0 %1172 }
0x1566   :  { %v1175_v25 = vadd.f32 %v1173_v22, %v1165_v20  ;;  %v1195_v26 = vpop.permute.xlu1 %1194 }
0x1567   :  { %v1197_v27 = vadd.f32 %v1195_v26, %v1187_v24 }
0x1568   :  { %1847 = vtanh.f32 %v1175_v25 }
0x1569   :  { %1849 = vtanh.f32 %v1197_v27 }
0x1572   :  { %v1848_v28 = vpop.eup %1847 }
0x1573   :  { %v1850_v29 = vpop.eup %1849  ;;  %1178 = vrot.lane.b32.xlu0 %v1848_v28, %s1983_s30 }
0x1574   :  { %1200 = vrot.lane.b32.xlu1 %v1850_v29, %s1983_s30 }
0x15e5   :  { %v1179_v35 = vpop.permute.xlu0 %1178 }
0x15e6   :  { %v1181_v53 = vmul.f32 %v1179_v35, %v1163_v16  ;;  %v1201_v36 = vpop.permute.xlu1 %1200 }
0x15e7   :  { %v1203_v41 = vmul.f32 %v1201_v36, %v1185_v31 }
0x15e8   :  { %1210 = vrot.lane.b32.xlu0 %v1181_v53, %s1985_s2 }
0x15e9   :  { %1213 = vrot.lane.b32.xlu1 %v1203_v41, %s1986_s4 }
0x165a   :  { %v1211_v42 = vpop.permute.xlu0 %1210 }
0x165b   :  { %v1214_v47 = vpop.permute.xlu1 %1213 }
0x165c   :  { %v1216_v48 = vsel %vm278_vm1, %v1211_v42, %v1214_v47 }
0x165d   :  { %1510 = vmatmul.mubr.msk.f32.vlgmr.msra.gmra.mrb[14].mxu0 %vm105_vm0, %v1216_v48 }
0x1730   :  { %v1286_v52 = vpop.f32.mrb[14].mxu0 }
0x1731   :  { %v1287_v43 = vpop.f32.mrb[15].mxu0 }
0x1732   :  { %v1290_v30 = vadd.f32 %v2160_v59, %v1287_v43 }
0x1734   :  { %1851 = vtanh.f32 %v1290_v30  ;;  %v1291_v37 = vmul.f32 0.5, %v1290_v30 }
0x1736   :  { %1853 = vtanh.f32 %v1291_v37 }
0x173e   :  { %v1852_v32 = vpop.eup %1851 }
0x173f   :  { %1298 = vrot.lane.b32.xlu0 %v1852_v32, %s1983_s30 }
0x1740   :  { %v1854_v44 = vpop.eup %1853 }
0x1741   :  { %v1293_v34 = vmul.f32 0.5, %v1854_v44 }
0x1743   :  { %v1294_v45 = vadd.f32 0.5, %v1293_v34 }
0x1745   :  { %v1296_v59 = vmul.f32 %v1294_v45, %v1197_v27 }
0x17b1   :  { %v1299_v46 = vpop.permute.xlu0 %1298 }
0x17b2   :  { %v1301_v49 = vmul.f32 %v1299_v46, %v1294_v45 }
0x17b4   :  { %1303 = vrot.lane.b32.xlu1 %v1301_v49, %s1983_s30 }
0x17b8   :  { %407 = vrot.lane.b32.xlu1 %v2183_v33, %s1985_s2  ;;  %v1328_v33 = vld [vmem:[#allocation9 + $0x10] sm:$0xff] }
0x17bc   :  { %673 = vrot.lane.b32.xlu1 %v2244_v4, %s1985_s2  ;;  %v1744_v4 = vpack.c.bf16 %v1329_v60, %v1328_v33 }
0x17be   :  { %1745 = vmatprep.subr.bf16.mxu1 %v1744_v4 }
0x17bf   :  { %1747 = vmatpush3.bf16.msra.mxu1 %v1744_v4 }
0x17c0   :  { %939 = vrot.lane.b32.xlu1 %v2293_v23, %s1985_s2 }
0x17c4   :  { %1205 = vrot.lane.b32.xlu1 %v1203_v41, %s1985_s2 }
0x1826   :  { %v1304_v51 = vpop.permute.xlu1 %1303 }
0x1827   :  { %v1306_v54 = vadd.f32 %v1304_v51, %v1296_v59 }
0x1829   :  { %1855 = vtanh.f32 %v1306_v54 }
0x182a   :  { %v408_v58 = vpop.permute.xlu1 %407 }
0x182b   :  { %410 = vst.msk [vmem:[#allocation2] sm:$0xff] %vm278_vm1, %v408_v58 }
0x182e   :  { %v674_v61 = vpop.permute.xlu1 %673 }
0x182f   :  { %676 = vst.msk [vmem:[#allocation2 + $0x10] sm:$0xff] %vm278_vm1, %v674_v61 }
0x1832   :  { %v940_v23 = vpop.permute.xlu1 %939  ;;  %v1318_v62 = vld [vmem:[#allocation2] sm:$0xff] }
0x1833   :  { %v1856_v63 = vpop.eup %1855  ;;  %942 = vst.msk [vmem:[#allocation2 + $0x20] sm:$0xff] %vm278_vm1, %v940_v23  ;;  %1584 = vmatprep.mubr.msk.f32.mxu1 %vm278_vm1, %v1318_v62 }
0x1834   :  { %1309 = vrot.lane.b32.xlu0 %v1856_v63, %s1983_s30 }
0x1836   :  { %v1206_v1 = vpop.permute.xlu1 %1205 }
0x1837   :  { %1208 = vst.msk [vmem:[#allocation2 + $0x30] sm:$0xff] %vm278_vm1, %v1206_v1 }
0x1838   :  { %540 = vrot.lane.b32.xlu0 %v2219_v21, %s1985_s2  ;;  %v1320_v21 = vld [vmem:[#allocation2 + $0x10] sm:$0xff] }
0x183c   :  { %806 = vrot.lane.b32.xlu0 %v2269_v50, %s1985_s2 }
0x183e   :  { %v1324_v9 = vld [vmem:[#allocation2 + $0x30] sm:$0xff] }
0x1840   :  { %1072 = vrot.lane.b32.xlu0 %v2317_v0, %s1985_s2  ;;  %v1322_v0 = vld [vmem:[#allocation2 + $0x20] sm:$0xff] }
0x18a6   :  { %v1310_v2 = vpop.permute.xlu0 %1309 }
0x18a7   :  { %v1312_v3 = vmul.f32 %v1310_v2, %v1294_v45 }
0x18a9   :  { %1314 = vrot.lane.b32.xlu0 %v1312_v3, %s1985_s2 }
0x18aa   :  { %v541_v38 = vpop.permute.xlu0 %540 }
0x18ab   :  { %543 = vst.msk [vmem:[#allocation2 + $0x8] sm:$0xff] %vm278_vm1, %v541_v38 }
0x18ae   :  { %v807_v5 = vpop.permute.xlu0 %806 }
0x18af   :  { %809 = vst.msk [vmem:[#allocation2 + $0x18] sm:$0xff] %vm278_vm1, %v807_v5 }
0x18b2   :  { %v1073_v6 = vpop.permute.xlu0 %1072  ;;  %v1319_v7 = vld [vmem:[#allocation2 + $0x8] sm:$0xff] }
0x18b3   :  { %1075 = vst.msk [vmem:[#allocation2 + $0x28] sm:$0xff] %vm278_vm1, %v1073_v6  ;;  %1585 = vmatmul.mubr.msk.f32.vlgmr.msra.gmra.mrb[8].mxu1 %vm278_vm1, %v1319_v7 }
0x18b4   :  { %1587 = vmatprep.mubr.msk.f32.mxu1 %vm278_vm1, %v1320_v21 }
0x18b6   :  { %v1321_v50 = vld [vmem:[#allocation2 + $0x18] sm:$0xff] }
0x18b7   :  { %1588 = vmatmul.mubr.msk.f32.gmra.mrb[10].mxu1 %vm278_vm1, %v1321_v50 }
0x18b8   :  { %1590 = vmatprep.mubr.msk.f32.mxu1 %vm278_vm1, %v1322_v0 }
0x18ba   :  { %v1323_v8 = vld [vmem:[#allocation2 + $0x28] sm:$0xff] }
0x18bb   :  { %1591 = vmatmul.mubr.msk.f32.gmra.mrb[12].mxu1 %vm278_vm1, %v1323_v8 }
0x18bc   :  { %1593 = vmatprep.mubr.msk.f32.mxu1 %vm278_vm1, %v1324_v9 }
0x191b   :  { %v1315_v10 = vpop.permute.xlu0 %1314 }
0x191c   :  { %1317 = vst.msk [vmem:[#allocation2 + $0x38] sm:$0xff] %vm278_vm1, %v1315_v10 }
0x1923   :  { %v1325_v11 = vld [vmem:[#allocation2 + $0x38] sm:$0xff] }
0x1924   :  { %1594 = vmatmul.mubr.msk.f32.gmra.mrb[14].mxu1 %vm278_vm1, %v1325_v11 }
0x1986   :  { %v1586_v13 = vpop.f32.mrb[8].mxu1 }
0x1987   :  { %v1433_v15 = vadd.f32 %v1586_v13, %v1511_v12  ;;  %v1427_v14 = vpop.f32.mrb[9].mxu1 }
0x1988   :  { %v1428_v40 = vadd.f32 %v1511_v12, %v1427_v14 }
0x1989   :  { %1467 = vst [vmem:[#allocation11 + $0x8] sm:$0xff] %v1433_v15 }
0x198a   :  { %1466 = vst [vmem:[#allocation11] sm:$0xff] %v1428_v40  ;;  %v1589_v16 = vpop.f32.mrb[10].mxu1 }
0x198b   :  { %v1443_v17 = vadd.f32 %v1589_v16, %v1511_v12  ;;  %v1437_v31 = vpop.f32.mrb[11].mxu1 }
0x198c   :  { %v1438_v19 = vadd.f32 %v1511_v12, %v1437_v31 }
0x198d   :  { %1469 = vst [vmem:[#allocation11 + $0x18] sm:$0xff] %v1443_v17 }
0x198e   :  { %1468 = vst [vmem:[#allocation11 + $0x10] sm:$0xff] %v1438_v19  ;;  %v1592_v39 = vpop.f32.mrb[12].mxu1 }
0x198f   :  { %v1453_v18 = vadd.f32 %v1592_v39, %v1511_v12  ;;  %v1447_v20 = vpop.f32.mrb[13].mxu1 }
0x1990   :  { %v1448_v22 = vadd.f32 %v1511_v12, %v1447_v20 }
0x1991   :  { %1471 = vst [vmem:[#allocation11 + $0x28] sm:$0xff] %v1453_v18 }
0x1992   :  { %1470 = vst [vmem:[#allocation11 + $0x20] sm:$0xff] %v1448_v22 }
0x19f7   :  { %v1595_v24 = vpop.f32.mrb[14].mxu1 }
0x19f8   :  { %v1463_v25 = vadd.f32 %v1595_v24, %v1511_v12  ;;  %v1457_v26 = vpop.f32.mrb[15].mxu1 }
0x19f9   :  { %v1458_v27 = vadd.f32 %v1511_v12, %v1457_v26 }
0x19fa   :  { %1473 = vst [vmem:[#allocation11 + $0x38] sm:$0xff] %v1463_v25 }
0x19fb   :  { %1472 = vst [vmem:[#allocation11 + $0x30] sm:$0xff] %v1458_v27 }
0x19fc   :  { %1956 = shalt.err (!%p1953_p8)
}
0x19fd   :  { %s1957_s16 = scalar_lea.hbm %s2396_s7, 1024 }
0x19fe   :  { %p1958_p9 = scmp.ne.s32.totalorder %s2396_s7, %s1957_s16  ;;  %p1961_p10 = scmp.lt.u32.totalorder %s1957_s16, %s2396_s7 }
0x1a00   :  { %p1963_p11 = pnand %p1961_p10, %p1958_p9 }
0x1a02   :  { %1966 = shalt.err (!%p1963_p11)
}
0x1a03   :  { %1485 = dma.vmem_to_hbm [thread:$0]  %s1480_s6, 1024, %s2396_s7, [#allocation5], %s1977_s13, %s1977_s13, %s1978_s14  }
0x1a04   :  { %1973 = dma.done.wait [#allocation5], 1024  }
0x1a05   :  { %1974 = vsyncadd [#allocation5], 4294966272 }
0x1a06   :  { %1489 = vsyncpa [#allocation4], 1 }
0x1a07   :  { %1490 = vsyncpa [#allocation7], 1 }
0x1a08   :  { %1491 = vsyncpa [#allocation10], 1 }
0x1a09   :  { %1492 = vsyncpa [#allocation5], 1 }

</bundles_post_ra>
